<compile_context>
chip_gen: v6e
topology: v6e:2x2x1
jax: 0.10.0
libtpu: 0.0.40
codegen_flags: <defaults>
</compile_context>

<pallas_src>
import numpy as np
import jax
import jax.numpy as jnp
from jax.experimental import pallas as pl
from jax.experimental.pallas import tpu as pltpu

SR = 16000
N_FFT = 512
WIN_LENGTH = 400
HOP = 160
N_MELS = 64
COEF = 0.97
N_BIN = N_FFT // 2          # 256: Nyquist bin dropped (zero mel weight, checked in __main__)
EPS_LOG = 1e-9
EPS_IN = 1e-5
LANE = 128
MAX_TILE_F = 512            # frame-tile width for long clips (multiple of 128)


# ---------------------------------------------------------------------------
# Deterministic parameter construction (same math as librosa.filters.mel and
# torch.hamming_window defaults) -- no file loads.
# ---------------------------------------------------------------------------
def _hz_to_mel(f):
    f = np.asarray(f, dtype=np.float64)
    f_sp = 200.0 / 3
    mels = f / f_sp
    min_log_hz = 1000.0
    min_log_mel = min_log_hz / f_sp
    logstep = np.log(6.4) / 27.0
    return np.where(f >= min_log_hz,
                    min_log_mel + np.log(np.maximum(f, min_log_hz) / min_log_hz) / logstep,
                    mels)


def _mel_to_hz(m):
    m = np.asarray(m, dtype=np.float64)
    f_sp = 200.0 / 3
    freqs = f_sp * m
    min_log_hz = 1000.0
    min_log_mel = min_log_hz / f_sp
    logstep = np.log(6.4) / 27.0
    return np.where(m >= min_log_mel,
                    min_log_hz * np.exp(logstep * (m - min_log_mel)),
                    freqs)


def mel_filterbank(sr=SR, n_fft=N_FFT, n_mels=N_MELS):
    """librosa-style slaney mel filterbank, full shape (n_mels, 1 + n_fft//2)."""
    fmin, fmax = 0.0, sr / 2.0
    mel_pts = np.linspace(_hz_to_mel(fmin), _hz_to_mel(fmax), n_mels + 2)
    mel_f = _mel_to_hz(mel_pts)
    fftfreqs = np.linspace(0.0, sr / 2.0, 1 + n_fft // 2)
    fdiff = np.diff(mel_f)
    ramps = mel_f[:, None] - fftfreqs[None, :]
    lower = -ramps[:-2] / fdiff[:-1, None]
    upper = ramps[2:] / fdiff[1:, None]
    weights = np.maximum(0.0, np.minimum(lower, upper))
    enorm = 2.0 / (mel_f[2:n_mels + 2] - mel_f[:n_mels])
    weights = weights * enorm[:, None]
    return weights.astype(np.float32)


def hamming_window(win_length=WIN_LENGTH):
    """torch.hamming_window default (periodic=True)."""
    n = np.arange(win_length, dtype=np.float64)
    return (0.54 - 0.46 * np.cos(2.0 * np.pi * n / win_length)).astype(np.float32)


def stacked_dft_matrix():
    """Real-DFT basis (bins 0..N_BIN-1, Nyquist dropped) folded with the zero-padded, centered
    hamming window; cos rows stacked on top of sin rows: shape (2*N_BIN, N_FFT) = (512, 512)."""
    win = np.zeros(N_FFT, dtype=np.float64)
    lpad = (N_FFT - WIN_LENGTH) // 2
    win[lpad:lpad + WIN_LENGTH] = hamming_window()
    n = np.arange(N_FFT, dtype=np.float64)
    k = np.arange(N_BIN, dtype=np.float64)
    ang = 2.0 * np.pi * np.outer(k, n) / N_FFT
    cos_mat = np.cos(ang) * win[None, :]
    sin_mat = np.sin(ang) * win[None, :]
    return np.concatenate([cos_mat, sin_mat], axis=0).astype(np.float32)


# ---------------------------------------------------------------------------
# Pallas kernel: stacked windowed DFT matmul -> 0.5*log(re^2+im^2+eps^2) -> mel matmul,
# with one-pass masked instance-norm accumulated across frame tiles.
# ---------------------------------------------------------------------------
def _make_mel_kernel(n_frames: int, tile_f: int, n_tiles: int):
    inv_n = 1.0 / float(n_frames)

    def kernel(frames_ref, cs_ref, mel_ref, out_ref, s_ref, s2_ref):
        ft = pl.program_id(1)

        @pl.when(ft == 0)
        def _():
            s_ref[...] = jnp.zeros_like(s_ref)
            s2_ref[...] = jnp.zeros_like(s2_ref)

        # Windowed real DFT of this frame tile: one stacked (cos|sin) MXU matmul.
        cs = jnp.dot(cs_ref[...], frames_ref[...],
                     preferred_element_type=jnp.float32)            # (2*N_BIN, tile_f)
        re = cs[:N_BIN]
        im = cs[N_BIN:]
        # log(|X| + 1e-9) ~= 0.5*log(|X|^2 + 1e-18): single EUP transcendental per element.
        logmag = 0.5 * jnp.log(re * re + im * im + EPS_LOG * EPS_LOG)
        mel = jnp.dot(mel_ref[...], logmag,
                      preferred_element_type=jnp.float32)           # (N_MELS, tile_f)

        # Accumulate instance-norm statistics; mask out lane-padding frame columns.
        col = ft * tile_f + jax.lax.broadcasted_iota(jnp.int32, (1, tile_f), 1)
        valid = (col < n_frames).astype(jnp.float32)                # (1, tile_f)
        mv = mel * valid
        s_ref[...] += jnp.sum(mv, axis=-1, keepdims=True)
        s2_ref[...] += jnp.sum(mel * mv, axis=-1, keepdims=True)

        # Stash the un-normalized mel tile into the (resident) output block.
        start = pl.multiple_of(ft * tile_f, tile_f)
        out_ref[:, pl.ds(start, tile_f)] = mel

        # Finalize: per-(batch, channel) instance norm over the true frame count.
        @pl.when(ft == n_tiles - 1)
        def _():
            mean = s_ref[...] * inv_n
            var = s2_ref[...] * inv_n - mean * mean                 # biased, like torch
            rstd = jax.lax.rsqrt(var + EPS_IN)
            out_ref[...] = (out_ref[...] - mean) * rstd

    return kernel


def _round_up(x, m):
    return (x + m - 1) // m * m


@jax.jit
def mel_spectrogram(x, cs_mat, mel_basis):
    """x: (B, T) float32 -> (B, 1, n_mels, 1 + T // hop) float32."""
    B, T = x.shape
    # Pre-emphasis with 1-sample reflect pad (== PreEmphasis module).
    xp = jnp.pad(x, ((0, 0), (1, 0)), mode="reflect")
    y = xp[:, 1:] - COEF * xp[:, :-1]
    # torch.stft(center=True, pad_mode='reflect'): reflect-pad n_fft//2 on both sides.
    y = jnp.pad(y, ((0, 0), (N_FFT // 2, N_FFT // 2)), mode="reflect")

    n_frames = 1 + T // HOP
    if n_frames <= MAX_TILE_F:
        tile_f = _round_up(n_frames, LANE)
        f_pad = tile_f
    else:
        tile_f = MAX_TILE_F
        f_pad = _round_up(n_frames, tile_f)
    n_tiles = f_pad // tile_f

    # Gather frames directly in (n_fft, frame) layout (frames on the lane axis).  Indices of
    # the lane-padding frames are clamped; their values are masked out of the statistics and
    # sliced off below.
    # TODO(synk): frame inside the kernel via manual DMA of the padded waveform to avoid
    # materializing the 3.2x-expanded frame tensor in HBM.
    idx = np.arange(f_pad)[None, :] * HOP + np.arange(N_FFT)[:, None]   # (n_fft, f_pad)
    idx = np.minimum(idx, T + N_FFT - 1).astype(np.int32)
    frames = y[:, idx]                                                  # (B, n_fft, f_pad)

    kernel = _make_mel_kernel(n_frames, tile_f, n_tiles)
    out = pl.pallas_call(
        kernel,
        out_shape=jax.ShapeDtypeStruct((B, N_MELS, f_pad), jnp.float32),
        grid=(B, n_tiles),
        in_specs=[
            pl.BlockSpec((None, N_FFT, tile_f), lambda b, ft: (b, 0, ft)),
            pl.BlockSpec((2 * N_BIN, N_FFT), lambda b, ft: (0, 0)),
            pl.BlockSpec((N_MELS, N_BIN), lambda b, ft: (0, 0)),
        ],
        out_specs=pl.BlockSpec((None, N_MELS, f_pad), lambda b, ft: (b, 0, 0)),
        scratch_shapes=[
            pltpu.VMEM((N_MELS, 1), jnp.float32),   # running sum
            pltpu.VMEM((N_MELS, 1), jnp.float32),   # running sum of squares
        ],
        compiler_params=pltpu.CompilerParams(
            dimension_semantics=("parallel", "arbitrary"),
            vmem_limit_bytes=48 * 1024 * 1024,
        ),
    )(frames, cs_mat, mel_basis)

    return out[:, :, :n_frames][:, None, :, :]        # (B, 1, n_mels, n_frames)


# ---------------------------------------------------------------------------
# Pure-JAX reference (rfft, full 257-bin filterbank, torch eps semantics).
# ---------------------------------------------------------------------------
def reference(x, mel_basis_full):
    B, T = x.shape
    xp = jnp.pad(x, ((0, 0), (1, 0)), mode="reflect")
    y = xp[:, 1:] - COEF * xp[:, :-1]
    y = jnp.pad(y, ((0, 0), (N_FFT // 2, N_FFT // 2)), mode="reflect")
    n_frames = 1 + T // HOP
    idx = np.arange(n_frames)[:, None] * HOP + np.arange(N_FFT)[None, :]
    frames = y[:, idx]                                   # (B, F, n_fft)
    win = np.zeros(N_FFT, dtype=np.float32)
    lpad = (N_FFT - WIN_LENGTH) // 2
    win[lpad:lpad + WIN_LENGTH] = hamming_window()
    spec = jnp.fft.rfft(frames * win, axis=-1)           # (B, F, 257)
    logmag = jnp.log(jnp.abs(spec) + EPS_LOG)
    mel = jnp.einsum("mk,bfk->bmf", mel_basis_full, logmag)
    mean = mel.mean(-1, keepdims=True)
    var = ((mel - mean) ** 2).mean(-1, keepdims=True)
    return ((mel - mean) / jnp.sqrt(var + EPS_IN))[:, None, :, :]


if __name__ == "__main__":
    B = 2
    T = 4960                                             # -> 1 + T//hop = 32 frames
    key = jax.random.PRNGKey(0)
    x = jax.random.normal(key, (B, T), dtype=jnp.float32)

    mel_full = mel_filterbank()                          # (64, 257) for the reference
    # Dropping the Nyquist bin is only valid because its mel weight is ~0.
    assert float(np.abs(mel_full[:, N_BIN:]).max()) < 1e-6
    cs_mat = jnp.asarray(stacked_dft_matrix())           # (512, 512)
    mel_basis = jnp.asarray(mel_full[:, :N_BIN])         # (64, 256)

    out = jax.block_until_ready(mel_spectrogram(x, cs_mat, mel_basis))
    ref = jax.block_until_ready(reference(x, jnp.asarray(mel_full)))

    assert out.shape == (B, 1, N_MELS, 1 + T // HOP), out.shape
    np.testing.assert_allclose(np.asarray(out), np.asarray(ref), rtol=1e-2, atol=1e-2)

    print("KERNEL_OK")
</pallas_src>

<mosaic_0001>
module attributes {stable_mosaic.version = 11 : i64} {
  func.func @kernel(%arg0: i32, %arg1: i32, %arg2: memref<1x512x128xf32, #tpu.memory_space<vmem>>, %arg3: memref<512x512xf32, #tpu.memory_space<vmem>>, %arg4: memref<64x256xf32, #tpu.memory_space<vmem>>, %arg5: memref<1x64x128xf32, #tpu.memory_space<vmem>>, %arg6: memref<64x1xf32, #tpu.memory_space<vmem>>, %arg7: memref<64x1xf32, #tpu.memory_space<vmem>>) attributes {dimension_semantics = [#tpu.dimension_semantics<parallel>, #tpu.dimension_semantics<arbitrary>], iteration_bounds = array<i64: 2, 1>, scalar_prefetch = 0 : i64, scratch_operands = 2 : i64, tpu.core_type = #tpu.core_type<tc>, window_params = [{transform_indices = @transform_0, window_bounds = array<i64: 1, 512, 128>}, {pipeline_mode = #tpu.pipeline_mode<synchronous>, transform_indices = @transform_1, window_bounds = array<i64: 512, 512>}, {pipeline_mode = #tpu.pipeline_mode<synchronous>, transform_indices = @transform_2, window_bounds = array<i64: 64, 256>}, {transform_indices = @transform_3, window_bounds = array<i64: 1, 64, 128>}]} {
    %c0_i32 = arith.constant 0 : i32
    %0 = arith.cmpi eq, %arg1, %c0_i32 : i32
    %1 = arith.extui %0 : i1 to i32
    %c0_i32_0 = arith.constant 0 : i32
    %2 = arith.cmpi ne, %1, %c0_i32_0 : i32
    scf.if %2 {
      %cst_25 = arith.constant 0.000000e+00 : f32
      %49 = vector.broadcast %cst_25 : f32 to vector<64x1xf32>
      %c0_26 = arith.constant 0 : index
      %c0_27 = arith.constant 0 : index
      %50 = vector.load %arg6[%c0_26, %c0_27] : memref<64x1xf32, #tpu.memory_space<vmem>>, vector<64x1xf32>
      tpu.vector_store %arg6[%c0_26, %c0_27], %49 {strides = array<i32>} : memref<64x1xf32, #tpu.memory_space<vmem>>, vector<64x1xf32>,
      %cst_28 = arith.constant 0.000000e+00 : f32
      %51 = vector.broadcast %cst_28 : f32 to vector<64x1xf32>
      %c0_29 = arith.constant 0 : index
      %c0_30 = arith.constant 0 : index
      %52 = vector.load %arg7[%c0_29, %c0_30] : memref<64x1xf32, #tpu.memory_space<vmem>>, vector<64x1xf32>
      tpu.vector_store %arg7[%c0_29, %c0_30], %51 {strides = array<i32>} : memref<64x1xf32, #tpu.memory_space<vmem>>, vector<64x1xf32>,
    } else {
    }
    %c0 = arith.constant 0 : index
    %c0_1 = arith.constant 0 : index
    %3 = vector.load %arg3[%c0, %c0_1] : memref<512x512xf32, #tpu.memory_space<vmem>>, vector<512x512xf32>
    %c0_2 = arith.constant 0 : index
    %c0_3 = arith.constant 0 : index
    %c0_4 = arith.constant 0 : index
    %4 = vector.load %arg2[%c0_2, %c0_3, %c0_4] : memref<1x512x128xf32, #tpu.memory_space<vmem>>, vector<1x512x128xf32>
    %5 = vector.shape_cast %4 : vector<1x512x128xf32> to vector<512x128xf32>
    %cst = arith.constant dense<0.000000e+00> : vector<512x128xf32>
    %6 = tpu.matmul %3, %5, %cst {dimension_numbers = #tpu.dot_dimension_numbers<[1], [0], [0], [1], [0, 0, 1, 1], [], []>} : vector<512x512xf32>, vector<512x128xf32>, vector<512x128xf32> -> vector<512x128xf32>
    %7 = vector.extract_strided_slice %6 {offsets = [0, 0], sizes = [256, 128], strides = [1, 1]} : vector<512x128xf32> to vector<256x128xf32>
    %8 = vector.extract_strided_slice %6 {offsets = [256, 0], sizes = [256, 128], strides = [1, 1]} : vector<512x128xf32> to vector<256x128xf32>
    %9 = arith.mulf %7, %7 : vector<256x128xf32>
    %10 = arith.mulf %8, %8 : vector<256x128xf32>
    %11 = arith.addf %9, %10 : vector<256x128xf32>
    %cst_5 = arith.constant 1.000000e-18 : f32
    %12 = vector.broadcast %cst_5 : f32 to vector<256x128xf32>
    %13 = arith.addf %11, %12 : vector<256x128xf32>
    %14 = math.log %13 : vector<256x128xf32>
    %cst_6 = arith.constant 5.000000e-01 : f32
    %15 = vector.broadcast %cst_6 : f32 to vector<256x128xf32>
    %16 = arith.mulf %15, %14 : vector<256x128xf32>
    %c0_7 = arith.constant 0 : index
    %c0_8 = arith.constant 0 : index
    %17 = vector.load %arg4[%c0_7, %c0_8] : memref<64x256xf32, #tpu.memory_space<vmem>>, vector<64x256xf32>
    %cst_9 = arith.constant dense<0.000000e+00> : vector<64x128xf32>
    %18 = tpu.matmul %17, %16, %cst_9 {dimension_numbers = #tpu.dot_dimension_numbers<[1], [0], [0], [1], [0, 0, 1, 1], [], []>} : vector<64x256xf32>, vector<256x128xf32>, vector<64x128xf32> -> vector<64x128xf32>
    %c128_i32 = arith.constant 128 : i32
    %19 = arith.muli %arg1, %c128_i32 : i32
    %20 = tpu.iota {dimensions = array<i32: 1>} : vector<1x128xi32>
    %21 = vector.broadcast %19 : i32 to vector<1x128xi32>
    %22 = arith.addi %21, %20 : vector<1x128xi32>
    %c32_i32 = arith.constant 32 : i32
    %23 = vector.broadcast %c32_i32 : i32 to vector<1x128xi32>
    %24 = arith.cmpi slt, %22, %23 : vector<1x128xi32>
    %25 = arith.extui %24 : vector<1x128xi1> to vector<1x128xi32>
    %26 = arith.sitofp %25 : vector<1x128xi32> to vector<1x128xf32>
    %27 = vector.broadcast %26 : vector<1x128xf32> to vector<64x128xf32>
    %28 = arith.mulf %18, %27 : vector<64x128xf32>
    %c0_10 = arith.constant 0 : index
    %c0_11 = arith.constant 0 : index
    %29 = vector.load %arg6[%c0_10, %c0_11] : memref<64x1xf32, #tpu.memory_space<vmem>>, vector<64x1xf32>
    %cst_12 = arith.constant dense<0.000000e+00> : vector<64xf32>
    %30 = vector.multi_reduction <add>, %28, %cst_12 [1] : vector<64x128xf32> to vector<64xf32>
    %31 = vector.shape_cast %30 : vector<64xf32> to vector<64x1xf32>
    %32 = arith.addf %29, %31 : vector<64x1xf32>
    %c0_13 = arith.constant 0 : index
    %c0_14 = arith.constant 0 : index
    %33 = vector.load %arg6[%c0_13, %c0_14] : memref<64x1xf32, #tpu.memory_space<vmem>>, vector<64x1xf32>
    tpu.vector_store %arg6[%c0_13, %c0_14], %32 {strides = array<i32>} : memref<64x1xf32, #tpu.memory_space<vmem>>, vector<64x1xf32>,
    %c0_15 = arith.constant 0 : index
    %c0_16 = arith.constant 0 : index
    %34 = vector.load %arg7[%c0_15, %c0_16] : memref<64x1xf32, #tpu.memory_space<vmem>>, vector<64x1xf32>
    %35 = arith.mulf %18, %28 : vector<64x128xf32>
    %cst_17 = arith.constant dense<0.000000e+00> : vector<64xf32>
    %36 = vector.multi_reduction <add>, %35, %cst_17 [1] : vector<64x128xf32> to vector<64xf32>
    %37 = vector.shape_cast %36 : vector<64xf32> to vector<64x1xf32>
    %38 = arith.addf %34, %37 : vector<64x1xf32>
    %c0_18 = arith.constant 0 : index
    %c0_19 = arith.constant 0 : index
    %39 = vector.load %arg7[%c0_18, %c0_19] : memref<64x1xf32, #tpu.memory_space<vmem>>, vector<64x1xf32>
    tpu.vector_store %arg7[%c0_18, %c0_19], %38 {strides = array<i32>} : memref<64x1xf32, #tpu.memory_space<vmem>>, vector<64x1xf32>,
    %c128_i32_20 = arith.constant 128 : i32
    %40 = arith.muli %arg1, %c128_i32_20 : i32
    %41 = tpu.assume_multiple %40, 128 : i32
    %c0_21 = arith.constant 0 : index
    %c0_22 = arith.constant 0 : index
    %42 = arith.index_cast %41 : i32 to index
    %43 = vector.load %arg5[%c0_21, %c0_22, %42] : memref<1x64x128xf32, #tpu.memory_space<vmem>>, vector<1x64x128xf32>
    %44 = vector.shape_cast %43 : vector<1x64x128xf32> to vector<64x128xf32>
    %45 = vector.shape_cast %18 : vector<64x128xf32> to vector<1x64x128xf32>
    tpu.vector_store %arg5[%c0_21, %c0_22, %42], %45 {strides = array<i32>} : memref<1x64x128xf32, #tpu.memory_space<vmem>>, vector<1x64x128xf32>,
    %c0_i32_23 = arith.constant 0 : i32
    %46 = arith.cmpi eq, %arg1, %c0_i32_23 : i32
    %47 = arith.extui %46 : i1 to i32
    %c0_i32_24 = arith.constant 0 : i32
    %48 = arith.cmpi ne, %47, %c0_i32_24 : i32
    scf.if %48 {
      %c0_25 = arith.constant 0 : index
      %c0_26 = arith.constant 0 : index
      %49 = vector.load %arg6[%c0_25, %c0_26] : memref<64x1xf32, #tpu.memory_space<vmem>>, vector<64x1xf32>
      %cst_27 = arith.constant 3.125000e-02 : f32
      %50 = vector.broadcast %cst_27 : f32 to vector<64x1xf32>
      %51 = arith.mulf %49, %50 : vector<64x1xf32>
      %c0_28 = arith.constant 0 : index
      %c0_29 = arith.constant 0 : index
      %52 = vector.load %arg7[%c0_28, %c0_29] : memref<64x1xf32, #tpu.memory_space<vmem>>, vector<64x1xf32>
      %cst_30 = arith.constant 3.125000e-02 : f32
      %53 = vector.broadcast %cst_30 : f32 to vector<64x1xf32>
      %54 = arith.mulf %52, %53 : vector<64x1xf32>
      %55 = arith.mulf %51, %51 : vector<64x1xf32>
      %56 = arith.subf %54, %55 : vector<64x1xf32>
      %cst_31 = arith.constant 9.99999974E-6 : f32
      %57 = vector.broadcast %cst_31 : f32 to vector<64x1xf32>
      %58 = arith.addf %56, %57 : vector<64x1xf32>
      %59 = math.rsqrt %58 : vector<64x1xf32>
      %c0_32 = arith.constant 0 : index
      %c0_33 = arith.constant 0 : index
      %c0_34 = arith.constant 0 : index
      %60 = vector.load %arg5[%c0_32, %c0_33, %c0_34] : memref<1x64x128xf32, #tpu.memory_space<vmem>>, vector<1x64x128xf32>
      %61 = vector.shape_cast %60 : vector<1x64x128xf32> to vector<64x128xf32>
      %62 = vector.broadcast %51 : vector<64x1xf32> to vector<64x128xf32>
      %63 = arith.subf %61, %62 : vector<64x128xf32>
      %64 = vector.broadcast %59 : vector<64x1xf32> to vector<64x128xf32>
      %65 = arith.mulf %63, %64 : vector<64x128xf32>
      %c0_35 = arith.constant 0 : index
      %c0_36 = arith.constant 0 : index
      %c0_37 = arith.constant 0 : index
      %66 = vector.load %arg5[%c0_35, %c0_36, %c0_37] : memref<1x64x128xf32, #tpu.memory_space<vmem>>, vector<1x64x128xf32>
      %67 = vector.shape_cast %66 : vector<1x64x128xf32> to vector<64x128xf32>
      %68 = vector.shape_cast %65 : vector<64x128xf32> to vector<1x64x128xf32>
      tpu.vector_store %arg5[%c0_35, %c0_36, %c0_37], %68 {strides = array<i32>} : memref<1x64x128xf32, #tpu.memory_space<vmem>>, vector<1x64x128xf32>,
    } else {
    }
    return
  }
  func.func @transform_0(%arg0: i32, %arg1: i32) -> (i32, i32, i32) {
    %c0_i32 = arith.constant 0 : i32
    %c0_i32_0 = arith.constant 0 : i32
    return %arg0, %c0_i32, %arg1 : i32, i32, i32
  }
  func.func @transform_1(%arg0: i32, %arg1: i32) -> (i32, i32) {
    %c0_i32 = arith.constant 0 : i32
    %c0_i32_0 = arith.constant 0 : i32
    %c0_i32_1 = arith.constant 0 : i32
    return %c0_i32, %c0_i32_0 : i32, i32
  }
  func.func @transform_2(%arg0: i32, %arg1: i32) -> (i32, i32) {
    %c0_i32 = arith.constant 0 : i32
    %c0_i32_0 = arith.constant 0 : i32
    %c0_i32_1 = arith.constant 0 : i32
    return %c0_i32, %c0_i32_0 : i32, i32
  }
  func.func @transform_3(%arg0: i32, %arg1: i32) -> (i32, i32, i32) {
    %c0_i32 = arith.constant 0 : i32
    %c0_i32_0 = arith.constant 0 : i32
    %c0_i32_1 = arith.constant 0 : i32
    return %arg0, %c0_i32, %c0_i32_0 : i32, i32, i32
  }
}

</mosaic_0001>

<bundles_post_ra>
// kernel: mel_spectrogram.1
= control target key start
LH: loop header
LB: loop body
LE: loop exit
PB: predicated region body
PF: predicated region fallthrough
CT: control target
= control target key end

     0   :  { %s2271_s12 = smov 0   ;;  %s2273_s13 = smov 0   ;;  %s3562_s0 = inlined_call_operand.vmem [shape: f32[2,512,128], index: 0, kind: input, shape index: {}]   ;;  %s3563_s1 = inlined_call_operand.vmem [shape: f32[512,512], index: 1, kind: input, shape index: {}]   ;;  %s3564_s2 = inlined_call_operand.vmem [shape: f32[64,256], index: 2, kind: input, shape index: {}]   ;;  %s3565_s3 = inlined_call_operand.vmem [shape: f32[2,64,128], index: 3, kind: output, shape index: {}]  }
   0x1   :  { %s2275_s14 = smov 0  }
   0x2 LB: > { %s25_s15 = sadd.s32 1, %s2243_s13  ;;  %p2019_p0 = scmp.ge.s32.totalorder %s2247_s14, 1  ;;  %s2247_s14 = sphi %s2275_s14, %s13_s14   ;;  %s2243_s13 = sphi %s2273_s13, %s3574_s13   ;;  %s2239_s12 = sphi %s2271_s12, %s3573_s12  }
   0x3   : > { %p27_p1 = scmp.ge.s32.totalorder %s25_s15, 2  ;;  %p154_p2 = scmp.lt.s32.totalorder %s2247_s14, 3 }
   0x5   : > { %s3576_s15 = smov (%p27_p1, %s25_s15), 0  ;;  %p155_p3 = pnand %p2019_p0, %p154_p2 }
   0x7   : > { %158 = sbr.rel (%p155_p3) target bundleno = 1113 (0x459), region = 32 }
   0xc   : > { %p181_p4 = scmp.lt.s32.totalorder %s2239_s12, 1  ;;  %v216_v0 = vld [vmem:[%s3563_s1 + $0x8] sm:$0xff]  ;;  %v218_v1 = vld [vmem:[%s3563_s1 + $0x18] sm:$0xff]  ;;  %v3566_v2 = vmov 0.0   ;;  %vm198_vm0 = vcmask 7168  }
   0xd   : > { %535 = vmatprep.subr.mxu0 %v3566_v2  ;;  %920 = vmatprep.subr.mxu1 %v3566_v2 }
   0xe   : > { %s3578_s12 = smov (!%p181_p4, %s2239_s12), 1  ;;  %599 = vmatprep.mubr.f32.mxu0 %v216_v0  ;;  %984 = vmatprep.mubr.f32.mxu1 %v218_v1 }
   0xf   : > { %s2027_s20 = sshll.u32 %s3578_s12, 9  ;;  %s2028_s8 = sshll.u32 %s3578_s12, 6 }
  0x10   : > { %s2303_s23 = scalar_lea.vmem %s3562_s0, %s2027_s20  ;;  %s3536_s11 = scalar_lea.vmem %s3565_s3, %s2028_s8 }
  0x11   : > { %v486_v3 = vld [vmem:[%s2303_s23 + $0x78] sm:$0xff]  ;;  %v485_v5 = vld [vmem:[%s2303_s23 + $0x70] sm:$0xff]  ;;  %v484_v7 = vld [vmem:[%s2303_s23 + $0x68] sm:$0xff] }
  0x12   : > { %v518_v4 = vld [vmem:[%s2303_s23 + $0x178] sm:$0xff]  ;;  %536 = vmatpush1.msra.mxu0 %v486_v3  ;;  %v517_v6 = vld [vmem:[%s2303_s23 + $0x170] sm:$0xff]  ;;  %v516_v8 = vld [vmem:[%s2303_s23 + $0x168] sm:$0xff] }
  0x13   : > { %921 = vmatpush1.msra.mxu1 %v518_v4  ;;  %537 = vmatprep.subr.mxu0 %v3566_v2  ;;  %v483_v9 = vld [vmem:[%s2303_s23 + $0x60] sm:$0xff]  ;;  %v482_v11 = vld [vmem:[%s2303_s23 + $0x58] sm:$0xff]  ;;  %v481_v13 = vld [vmem:[%s2303_s23 + $0x50] sm:$0xff] }
  0x14   : > { %922 = vmatprep.subr.mxu1 %v3566_v2  ;;  %538 = vmatpush1.msra.mxu0 %v485_v5  ;;  %v515_v10 = vld [vmem:[%s2303_s23 + $0x160] sm:$0xff]  ;;  %v514_v12 = vld [vmem:[%s2303_s23 + $0x158] sm:$0xff]  ;;  %v513_v14 = vld [vmem:[%s2303_s23 + $0x150] sm:$0xff] }
  0x15   : > { %923 = vmatpush1.msra.mxu1 %v517_v6  ;;  %539 = vmatprep.subr.mxu0 %v3566_v2  ;;  %v480_v15 = vld [vmem:[%s2303_s23 + $0x48] sm:$0xff]  ;;  %v479_v17 = vld [vmem:[%s2303_s23 + $0x40] sm:$0xff]  ;;  %v478_v19 = vld [vmem:[%s2303_s23 + $0x38] sm:$0xff] }
  0x16   : > { %924 = vmatprep.subr.mxu1 %v3566_v2  ;;  %540 = vmatpush1.msra.mxu0 %v484_v7  ;;  %v512_v16 = vld [vmem:[%s2303_s23 + $0x148] sm:$0xff]  ;;  %v511_v18 = vld [vmem:[%s2303_s23 + $0x140] sm:$0xff]  ;;  %v510_v20 = vld [vmem:[%s2303_s23 + $0x138] sm:$0xff] }
  0x17   : > { %925 = vmatpush1.msra.mxu1 %v516_v8  ;;  %541 = vmatprep.subr.mxu0 %v3566_v2  ;;  %v477_v21 = vld [vmem:[%s2303_s23 + $0x30] sm:$0xff]  ;;  %v476_v23 = vld [vmem:[%s2303_s23 + $0x28] sm:$0xff]  ;;  %v475_v25 = vld [vmem:[%s2303_s23 + $0x20] sm:$0xff] }
  0x18   : > { %926 = vmatprep.subr.mxu1 %v3566_v2  ;;  %542 = vmatpush1.msra.mxu0 %v483_v9  ;;  %v509_v22 = vld [vmem:[%s2303_s23 + $0x130] sm:$0xff]  ;;  %v508_v24 = vld [vmem:[%s2303_s23 + $0x128] sm:$0xff]  ;;  %v507_v26 = vld [vmem:[%s2303_s23 + $0x120] sm:$0xff] }
  0x19   : > { %927 = vmatpush1.msra.mxu1 %v515_v10  ;;  %543 = vmatprep.subr.mxu0 %v3566_v2  ;;  %v474_v27 = vld [vmem:[%s2303_s23 + $0x18] sm:$0xff]  ;;  %v473_v29 = vld [vmem:[%s2303_s23 + $0x10] sm:$0xff]  ;;  %v472_v31 = vld [vmem:[%s2303_s23 + $0x8] sm:$0xff] }
  0x1a   : > { %928 = vmatprep.subr.mxu1 %v3566_v2  ;;  %544 = vmatpush1.msra.mxu0 %v482_v11  ;;  %v506_v28 = vld [vmem:[%s2303_s23 + $0x118] sm:$0xff]  ;;  %v505_v30 = vld [vmem:[%s2303_s23 + $0x110] sm:$0xff]  ;;  %v504_v32 = vld [vmem:[%s2303_s23 + $0x108] sm:$0xff] }
  0x1b   : > { %929 = vmatpush1.msra.mxu1 %v514_v12  ;;  %545 = vmatprep.subr.mxu0 %v3566_v2  ;;  %v471_v33 = vld [vmem:[%s2303_s23] sm:$0xff]  ;;  %v502_v35 = vld [vmem:[%s2303_s23 + $0xf8] sm:$0xff]  ;;  %v501_v37 = vld [vmem:[%s2303_s23 + $0xf0] sm:$0xff] }
  0x1c   : > { %930 = vmatprep.subr.mxu1 %v3566_v2  ;;  %546 = vmatpush1.msra.mxu0 %v481_v13  ;;  %v503_v34 = vld [vmem:[%s2303_s23 + $0x100] sm:$0xff]  ;;  %v534_v36 = vld [vmem:[%s2303_s23 + $0x1f8] sm:$0xff]  ;;  %v533_v38 = vld [vmem:[%s2303_s23 + $0x1f0] sm:$0xff] }
  0x1d   : > { %931 = vmatpush1.msra.mxu1 %v513_v14  ;;  %547 = vmatprep.subr.mxu0 %v3566_v2  ;;  %v500_v39 = vld [vmem:[%s2303_s23 + $0xe8] sm:$0xff]  ;;  %v499_v41 = vld [vmem:[%s2303_s23 + $0xe0] sm:$0xff]  ;;  %v498_v43 = vld [vmem:[%s2303_s23 + $0xd8] sm:$0xff] }
  0x1e   : > { %932 = vmatprep.subr.mxu1 %v3566_v2  ;;  %548 = vmatpush1.msra.mxu0 %v480_v15  ;;  %v532_v40 = vld [vmem:[%s2303_s23 + $0x1e8] sm:$0xff]  ;;  %v531_v42 = vld [vmem:[%s2303_s23 + $0x1e0] sm:$0xff]  ;;  %v530_v44 = vld [vmem:[%s2303_s23 + $0x1d8] sm:$0xff] }
  0x1f   : > { %933 = vmatpush1.msra.mxu1 %v512_v16  ;;  %549 = vmatprep.subr.mxu0 %v3566_v2  ;;  %v497_v45 = vld [vmem:[%s2303_s23 + $0xd0] sm:$0xff]  ;;  %v496_v47 = vld [vmem:[%s2303_s23 + $0xc8] sm:$0xff]  ;;  %v495_v49 = vld [vmem:[%s2303_s23 + $0xc0] sm:$0xff] }
  0x20   : > { %934 = vmatprep.subr.mxu1 %v3566_v2  ;;  %550 = vmatpush1.msra.mxu0 %v479_v17  ;;  %v529_v46 = vld [vmem:[%s2303_s23 + $0x1d0] sm:$0xff]  ;;  %v528_v48 = vld [vmem:[%s2303_s23 + $0x1c8] sm:$0xff]  ;;  %v527_v50 = vld [vmem:[%s2303_s23 + $0x1c0] sm:$0xff] }
  0x21   : > { %935 = vmatpush1.msra.mxu1 %v511_v18  ;;  %551 = vmatprep.subr.mxu0 %v3566_v2  ;;  %v494_v51 = vld [vmem:[%s2303_s23 + $0xb8] sm:$0xff]  ;;  %v493_v53 = vld [vmem:[%s2303_s23 + $0xb0] sm:$0xff]  ;;  %v492_v55 = vld [vmem:[%s2303_s23 + $0xa8] sm:$0xff] }
  0x22   : > { %936 = vmatprep.subr.mxu1 %v3566_v2  ;;  %552 = vmatpush1.msra.mxu0 %v478_v19  ;;  %v526_v52 = vld [vmem:[%s2303_s23 + $0x1b8] sm:$0xff]  ;;  %v525_v54 = vld [vmem:[%s2303_s23 + $0x1b0] sm:$0xff]  ;;  %v524_v56 = vld [vmem:[%s2303_s23 + $0x1a8] sm:$0xff] }
  0x23   : > { %937 = vmatpush1.msra.mxu1 %v510_v20  ;;  %553 = vmatprep.subr.mxu0 %v3566_v2  ;;  %v491_v57 = vld [vmem:[%s2303_s23 + $0xa0] sm:$0xff]  ;;  %v490_v59 = vld [vmem:[%s2303_s23 + $0x98] sm:$0xff]  ;;  %v489_v61 = vld [vmem:[%s2303_s23 + $0x90] sm:$0xff] }
  0x24   : > { %938 = vmatprep.subr.mxu1 %v3566_v2  ;;  %554 = vmatpush1.msra.mxu0 %v477_v21  ;;  %v523_v58 = vld [vmem:[%s2303_s23 + $0x1a0] sm:$0xff]  ;;  %v522_v60 = vld [vmem:[%s2303_s23 + $0x198] sm:$0xff]  ;;  %v521_v62 = vld [vmem:[%s2303_s23 + $0x190] sm:$0xff] }
  0x25   : > { %939 = vmatpush1.msra.mxu1 %v509_v22  ;;  %555 = vmatprep.subr.mxu0 %v3566_v2  ;;  %v488_v63 = vld [vmem:[%s2303_s23 + $0x88] sm:$0xff]  ;;  %v487_v1 = vld [vmem:[%s2303_s23 + $0x80] sm:$0xff]  ;;  %v217_v5 = vld [vmem:[%s3563_s1 + $0x10] sm:$0xff] }
  0x26   : > { %940 = vmatprep.subr.mxu1 %v3566_v2  ;;  %556 = vmatpush1.msra.mxu0 %v476_v23  ;;  %v520_v0 = vld [vmem:[%s2303_s23 + $0x188] sm:$0xff]  ;;  %v519_v3 = vld [vmem:[%s2303_s23 + $0x180] sm:$0xff]  ;;  %v222_v7 = vld [vmem:[%s3563_s1 + $0x38] sm:$0xff] }
  0x27   : > { %941 = vmatpush1.msra.mxu1 %v508_v24  ;;  %557 = vmatprep.subr.mxu0 %v3566_v2  ;;  %v215_v4 = vld [vmem:[%s3563_s1] sm:$0xff]  ;;  %v220_v6 = vld [vmem:[%s3563_s1 + $0x28] sm:$0xff]  ;;  %v221_v9 = vld [vmem:[%s3563_s1 + $0x30] sm:$0xff] }
  0x28   : > { %942 = vmatprep.subr.mxu1 %v3566_v2  ;;  %558 = vmatpush1.msra.mxu0 %v475_v25  ;;  %v219_v8 = vld [vmem:[%s3563_s1 + $0x20] sm:$0xff]  ;;  %v224_v10 = vld [vmem:[%s3563_s1 + $0x48] sm:$0xff]  ;;  %v226_v11 = vld [vmem:[%s3563_s1 + $0x58] sm:$0xff] }
  0x29   : > { %943 = vmatpush1.msra.mxu1 %v507_v26  ;;  %559 = vmatprep.subr.mxu0 %v3566_v2  ;;  %v223_v12 = vld [vmem:[%s3563_s1 + $0x40] sm:$0xff]  ;;  %v225_v13 = vld [vmem:[%s3563_s1 + $0x50] sm:$0xff]  ;;  %v228_v14 = vld [vmem:[%s3563_s1 + $0x68] sm:$0xff] }
  0x2a   : > { %944 = vmatprep.subr.mxu1 %v3566_v2  ;;  %560 = vmatpush1.msra.mxu0 %v474_v27  ;;  %v230_v15 = vld [vmem:[%s3563_s1 + $0x78] sm:$0xff]  ;;  %v227_v16 = vld [vmem:[%s3563_s1 + $0x60] sm:$0xff]  ;;  %v229_v17 = vld [vmem:[%s3563_s1 + $0x70] sm:$0xff] }
  0x2b   : > { %945 = vmatpush1.msra.mxu1 %v506_v28  ;;  %561 = vmatprep.subr.mxu0 %v3566_v2  ;;  %v232_v18 = vld [vmem:[%s3563_s1 + $0x88] sm:$0xff]  ;;  %v234_v19 = vld [vmem:[%s3563_s1 + $0x98] sm:$0xff]  ;;  %v231_v20 = vld [vmem:[%s3563_s1 + $0x80] sm:$0xff] }
  0x2c   : > { %946 = vmatprep.subr.mxu1 %v3566_v2  ;;  %562 = vmatpush1.msra.mxu0 %v473_v29  ;;  %v233_v21 = vld [vmem:[%s3563_s1 + $0x90] sm:$0xff]  ;;  %v236_v22 = vld [vmem:[%s3563_s1 + $0xa8] sm:$0xff]  ;;  %v238_v23 = vld [vmem:[%s3563_s1 + $0xb8] sm:$0xff] }
  0x2d   : > { %947 = vmatpush1.msra.mxu1 %v505_v30  ;;  %563 = vmatprep.subr.mxu0 %v3566_v2  ;;  %v235_v24 = vld [vmem:[%s3563_s1 + $0xa0] sm:$0xff]  ;;  %v237_v25 = vld [vmem:[%s3563_s1 + $0xb0] sm:$0xff]  ;;  %v240_v26 = vld [vmem:[%s3563_s1 + $0xc8] sm:$0xff] }
  0x2e   : > { %948 = vmatprep.subr.mxu1 %v3566_v2  ;;  %564 = vmatpush1.msra.mxu0 %v472_v31  ;;  %v242_v27 = vld [vmem:[%s3563_s1 + $0xd8] sm:$0xff]  ;;  %v239_v28 = vld [vmem:[%s3563_s1 + $0xc0] sm:$0xff]  ;;  %v241_v29 = vld [vmem:[%s3563_s1 + $0xd0] sm:$0xff] }
  0x2f   : > { %949 = vmatpush1.msra.mxu1 %v504_v32  ;;  %565 = vmatprep.subr.mxu0 %v3566_v2  ;;  %v244_v30 = vld [vmem:[%s3563_s1 + $0xe8] sm:$0xff]  ;;  %v246_v31 = vld [vmem:[%s3563_s1 + $0xf8] sm:$0xff]  ;;  %v243_v32 = vld [vmem:[%s3563_s1 + $0xe0] sm:$0xff] }
  0x30   : > { %950 = vmatprep.subr.mxu1 %v3566_v2  ;;  %566 = vmatpush1.msra.mxu0 %v471_v33  ;;  %v245_v33 = vld [vmem:[%s3563_s1 + $0xf0] sm:$0xff] }
  0x31   : > { %951 = vmatpush1.msra.mxu1 %v503_v34  ;;  %567 = vmatprep.subr.mxu0 %v3566_v2  ;;  %v248_v34 = vld [vmem:[%s3563_s1 + $0x108] sm:$0xff] }
  0x32   : > { %952 = vmatprep.subr.mxu1 %v3566_v2  ;;  %568 = vmatpush2.msra.mxu0 %v502_v35  ;;  %v250_v35 = vld [vmem:[%s3563_s1 + $0x118] sm:$0xff] }
  0x33   : > { %953 = vmatpush2.msra.mxu1 %v534_v36  ;;  %569 = vmatprep.subr.mxu0 %v3566_v2  ;;  %v247_v36 = vld [vmem:[%s3563_s1 + $0x100] sm:$0xff] }
  0x34   : > { %954 = vmatprep.subr.mxu1 %v3566_v2  ;;  %570 = vmatpush2.msra.mxu0 %v501_v37  ;;  %v249_v37 = vld [vmem:[%s3563_s1 + $0x110] sm:$0xff] }
  0x35   : > { %955 = vmatpush2.msra.mxu1 %v533_v38  ;;  %571 = vmatprep.subr.mxu0 %v3566_v2  ;;  %v252_v38 = vld [vmem:[%s3563_s1 + $0x128] sm:$0xff] }
  0x36   : > { %956 = vmatprep.subr.mxu1 %v3566_v2  ;;  %572 = vmatpush2.msra.mxu0 %v500_v39  ;;  %v254_v39 = vld [vmem:[%s3563_s1 + $0x138] sm:$0xff] }
  0x37   : > { %957 = vmatpush2.msra.mxu1 %v532_v40  ;;  %573 = vmatprep.subr.mxu0 %v3566_v2  ;;  %v251_v40 = vld [vmem:[%s3563_s1 + $0x120] sm:$0xff] }
  0x38   : > { %958 = vmatprep.subr.mxu1 %v3566_v2  ;;  %574 = vmatpush2.msra.mxu0 %v499_v41  ;;  %v253_v41 = vld [vmem:[%s3563_s1 + $0x130] sm:$0xff] }
  0x39   : > { %959 = vmatpush2.msra.mxu1 %v531_v42  ;;  %575 = vmatprep.subr.mxu0 %v3566_v2  ;;  %v256_v42 = vld [vmem:[%s3563_s1 + $0x148] sm:$0xff] }
  0x3a   : > { %960 = vmatprep.subr.mxu1 %v3566_v2  ;;  %576 = vmatpush2.msra.mxu0 %v498_v43  ;;  %v258_v43 = vld [vmem:[%s3563_s1 + $0x158] sm:$0xff] }
  0x3b   : > { %961 = vmatpush2.msra.mxu1 %v530_v44  ;;  %577 = vmatprep.subr.mxu0 %v3566_v2  ;;  %v255_v44 = vld [vmem:[%s3563_s1 + $0x140] sm:$0xff] }
  0x3c   : > { %962 = vmatprep.subr.mxu1 %v3566_v2  ;;  %578 = vmatpush2.msra.mxu0 %v497_v45  ;;  %v257_v45 = vld [vmem:[%s3563_s1 + $0x150] sm:$0xff] }
  0x3d   : > { %963 = vmatpush2.msra.mxu1 %v529_v46  ;;  %579 = vmatprep.subr.mxu0 %v3566_v2  ;;  %v260_v46 = vld [vmem:[%s3563_s1 + $0x168] sm:$0xff] }
  0x3e   : > { %964 = vmatprep.subr.mxu1 %v3566_v2  ;;  %580 = vmatpush2.msra.mxu0 %v496_v47  ;;  %v262_v47 = vld [vmem:[%s3563_s1 + $0x178] sm:$0xff] }
  0x3f   : > { %965 = vmatpush2.msra.mxu1 %v528_v48  ;;  %581 = vmatprep.subr.mxu0 %v3566_v2  ;;  %v259_v48 = vld [vmem:[%s3563_s1 + $0x160] sm:$0xff] }
  0x40   : > { %966 = vmatprep.subr.mxu1 %v3566_v2  ;;  %582 = vmatpush2.msra.mxu0 %v495_v49  ;;  %v261_v49 = vld [vmem:[%s3563_s1 + $0x170] sm:$0xff] }
  0x41   : > { %967 = vmatpush2.msra.mxu1 %v527_v50  ;;  %583 = vmatprep.subr.mxu0 %v3566_v2  ;;  %v264_v50 = vld [vmem:[%s3563_s1 + $0x188] sm:$0xff] }
  0x42   : > { %968 = vmatprep.subr.mxu1 %v3566_v2  ;;  %584 = vmatpush2.msra.mxu0 %v494_v51  ;;  %v266_v51 = vld [vmem:[%s3563_s1 + $0x198] sm:$0xff] }
  0x43   : > { %969 = vmatpush2.msra.mxu1 %v526_v52  ;;  %585 = vmatprep.subr.mxu0 %v3566_v2  ;;  %v263_v52 = vld [vmem:[%s3563_s1 + $0x180] sm:$0xff] }
  0x44   : > { %970 = vmatprep.subr.mxu1 %v3566_v2  ;;  %586 = vmatpush2.msra.mxu0 %v493_v53  ;;  %v265_v53 = vld [vmem:[%s3563_s1 + $0x190] sm:$0xff] }
  0x45   : > { %971 = vmatpush2.msra.mxu1 %v525_v54  ;;  %587 = vmatprep.subr.mxu0 %v3566_v2  ;;  %v268_v54 = vld [vmem:[%s3563_s1 + $0x1a8] sm:$0xff] }
  0x46   : > { %972 = vmatprep.subr.mxu1 %v3566_v2  ;;  %588 = vmatpush2.msra.mxu0 %v492_v55  ;;  %v270_v55 = vld [vmem:[%s3563_s1 + $0x1b8] sm:$0xff] }
  0x47   : > { %973 = vmatpush2.msra.mxu1 %v524_v56  ;;  %589 = vmatprep.subr.mxu0 %v3566_v2  ;;  %v267_v56 = vld [vmem:[%s3563_s1 + $0x1a0] sm:$0xff] }
  0x48   : > { %974 = vmatprep.subr.mxu1 %v3566_v2  ;;  %590 = vmatpush2.msra.mxu0 %v491_v57  ;;  %v269_v57 = vld [vmem:[%s3563_s1 + $0x1b0] sm:$0xff] }
  0x49   : > { %975 = vmatpush2.msra.mxu1 %v523_v58  ;;  %591 = vmatprep.subr.mxu0 %v3566_v2  ;;  %v272_v58 = vld [vmem:[%s3563_s1 + $0x1c8] sm:$0xff] }
  0x4a   : > { %976 = vmatprep.subr.mxu1 %v3566_v2  ;;  %592 = vmatpush2.msra.mxu0 %v490_v59  ;;  %v274_v59 = vld [vmem:[%s3563_s1 + $0x1d8] sm:$0xff] }
  0x4b   : > { %977 = vmatpush2.msra.mxu1 %v522_v60  ;;  %593 = vmatprep.subr.mxu0 %v3566_v2  ;;  %v271_v60 = vld [vmem:[%s3563_s1 + $0x1c0] sm:$0xff] }
  0x4c   : > { %978 = vmatprep.subr.mxu1 %v3566_v2  ;;  %594 = vmatpush2.msra.mxu0 %v489_v61  ;;  %v273_v61 = vld [vmem:[%s3563_s1 + $0x1d0] sm:$0xff] }
  0x4d   : > { %979 = vmatpush2.msra.mxu1 %v521_v62  ;;  %595 = vmatprep.subr.mxu0 %v3566_v2  ;;  %v276_v62 = vld [vmem:[%s3563_s1 + $0x1e8] sm:$0xff] }
  0x4e   : > { %980 = vmatprep.subr.mxu1 %v3566_v2  ;;  %596 = vmatpush2.msra.mxu0 %v488_v63  ;;  %v278_v63 = vld [vmem:[%s3563_s1 + $0x1f8] sm:$0xff] }
  0x4f   : > { %981 = vmatpush2.msra.mxu1 %v520_v0  ;;  %597 = vmatprep.subr.mxu0 %v3566_v2  ;;  %v275_v0 = vld [vmem:[%s3563_s1 + $0x1e0] sm:$0xff] }
  0x50   : > { %982 = vmatprep.subr.mxu1 %v3566_v2  ;;  %598 = vmatpush2.msra.mxu0 %v487_v1  ;;  %v277_v1 = vld [vmem:[%s3563_s1 + $0x1f0] sm:$0xff] }
  0x51   : > { %983 = vmatpush2.msra.mxu1 %v519_v3  ;;  %600 = vmatmul.mubr.f32.vlgmr.msra.gmra.mxu0 %v215_v4  ;;  %v280_v3 = vld [vmem:[%s3563_s1 + $0x208] sm:$0xff]  ;;  %v282_v4 = vld [vmem:[%s3563_s1 + $0x218] sm:$0xff] }
  0x52   : > { %985 = vmatmul.mubr.f32.vlgmr.msra.gmra.mxu1 %v217_v5  ;;  %604 = vmatprep.mubr.f32.mxu0 %v220_v6  ;;  %v279_v5 = vld [vmem:[%s3563_s1 + $0x200] sm:$0xff]  ;;  %v281_v6 = vld [vmem:[%s3563_s1 + $0x210] sm:$0xff] }
  0x53   : > { %989 = vmatprep.mubr.f32.mxu1 %v222_v7  ;;  %v284_v7 = vld [vmem:[%s3563_s1 + $0x228] sm:$0xff] }
  0x55   : > { %605 = vmatmul.mubr.f32.gmra.mxu0 %v219_v8  ;;  %v286_v8 = vld [vmem:[%s3563_s1 + $0x238] sm:$0xff] }
  0x56   : > { %990 = vmatmul.mubr.f32.gmra.mxu1 %v221_v9  ;;  %609 = vmatprep.mubr.f32.mxu0 %v224_v10  ;;  %v283_v9 = vld [vmem:[%s3563_s1 + $0x220] sm:$0xff]  ;;  %v285_v10 = vld [vmem:[%s3563_s1 + $0x230] sm:$0xff] }
  0x57   : > { %994 = vmatprep.mubr.f32.mxu1 %v226_v11  ;;  %v288_v11 = vld [vmem:[%s3563_s1 + $0x248] sm:$0xff] }
  0x59   : > { %610 = vmatmul.mubr.f32.gmra.mxu0 %v223_v12  ;;  %v290_v12 = vld [vmem:[%s3563_s1 + $0x258] sm:$0xff] }
  0x5a   : > { %995 = vmatmul.mubr.f32.gmra.mxu1 %v225_v13  ;;  %614 = vmatprep.mubr.f32.mxu0 %v228_v14  ;;  %v287_v13 = vld [vmem:[%s3563_s1 + $0x240] sm:$0xff]  ;;  %v289_v14 = vld [vmem:[%s3563_s1 + $0x250] sm:$0xff] }
  0x5b   : > { %999 = vmatprep.mubr.f32.mxu1 %v230_v15  ;;  %v292_v15 = vld [vmem:[%s3563_s1 + $0x268] sm:$0xff] }
  0x5d   : > { %615 = vmatmul.mubr.f32.gmra.mxu0 %v227_v16  ;;  %v294_v16 = vld [vmem:[%s3563_s1 + $0x278] sm:$0xff] }
  0x5e   : > { %1000 = vmatmul.mubr.f32.gmra.mxu1 %v229_v17  ;;  %619 = vmatprep.mubr.f32.mxu0 %v232_v18  ;;  %v291_v17 = vld [vmem:[%s3563_s1 + $0x260] sm:$0xff]  ;;  %v293_v18 = vld [vmem:[%s3563_s1 + $0x270] sm:$0xff] }
  0x5f   : > { %1004 = vmatprep.mubr.f32.mxu1 %v234_v19  ;;  %v296_v19 = vld [vmem:[%s3563_s1 + $0x288] sm:$0xff] }
  0x61   : > { %620 = vmatmul.mubr.f32.gmra.mxu0 %v231_v20  ;;  %v298_v20 = vld [vmem:[%s3563_s1 + $0x298] sm:$0xff] }
  0x62   : > { %1005 = vmatmul.mubr.f32.gmra.mxu1 %v233_v21  ;;  %624 = vmatprep.mubr.f32.mxu0 %v236_v22  ;;  %v295_v21 = vld [vmem:[%s3563_s1 + $0x280] sm:$0xff]  ;;  %v297_v22 = vld [vmem:[%s3563_s1 + $0x290] sm:$0xff] }
  0x63   : > { %1009 = vmatprep.mubr.f32.mxu1 %v238_v23  ;;  %v300_v23 = vld [vmem:[%s3563_s1 + $0x2a8] sm:$0xff] }
  0x65   : > { %625 = vmatmul.mubr.f32.gmra.mxu0 %v235_v24  ;;  %v302_v24 = vld [vmem:[%s3563_s1 + $0x2b8] sm:$0xff] }
  0x66   : > { %1010 = vmatmul.mubr.f32.gmra.mxu1 %v237_v25  ;;  %629 = vmatprep.mubr.f32.mxu0 %v240_v26  ;;  %v299_v25 = vld [vmem:[%s3563_s1 + $0x2a0] sm:$0xff]  ;;  %v301_v26 = vld [vmem:[%s3563_s1 + $0x2b0] sm:$0xff] }
  0x67   : > { %1014 = vmatprep.mubr.f32.mxu1 %v242_v27  ;;  %v304_v27 = vld [vmem:[%s3563_s1 + $0x2c8] sm:$0xff] }
  0x69   : > { %630 = vmatmul.mubr.f32.gmra.mxu0 %v239_v28  ;;  %v306_v28 = vld [vmem:[%s3563_s1 + $0x2d8] sm:$0xff] }
  0x6a   : > { %1015 = vmatmul.mubr.f32.gmra.mxu1 %v241_v29  ;;  %634 = vmatprep.mubr.f32.mxu0 %v244_v30  ;;  %v303_v29 = vld [vmem:[%s3563_s1 + $0x2c0] sm:$0xff]  ;;  %v305_v30 = vld [vmem:[%s3563_s1 + $0x2d0] sm:$0xff] }
  0x6b   : > { %1019 = vmatprep.mubr.f32.mxu1 %v246_v31  ;;  %v308_v31 = vld [vmem:[%s3563_s1 + $0x2e8] sm:$0xff] }
  0x6d   : > { %635 = vmatmul.mubr.f32.gmra.mxu0 %v243_v32  ;;  %v310_v32 = vld [vmem:[%s3563_s1 + $0x2f8] sm:$0xff] }
  0x6e   : > { %1020 = vmatmul.mubr.f32.gmra.mxu1 %v245_v33  ;;  %639 = vmatprep.mubr.f32.mxu0 %v248_v34  ;;  %v307_v33 = vld [vmem:[%s3563_s1 + $0x2e0] sm:$0xff]  ;;  %v309_v34 = vld [vmem:[%s3563_s1 + $0x2f0] sm:$0xff] }
  0x6f   : > { %1024 = vmatprep.mubr.f32.mxu1 %v250_v35  ;;  %v312_v35 = vld [vmem:[%s3563_s1 + $0x308] sm:$0xff] }
  0x71   : > { %640 = vmatmul.mubr.f32.gmra.mxu0 %v247_v36  ;;  %v314_v36 = vld [vmem:[%s3563_s1 + $0x318] sm:$0xff] }
  0x72   : > { %1025 = vmatmul.mubr.f32.gmra.mxu1 %v249_v37  ;;  %644 = vmatprep.mubr.f32.mxu0 %v252_v38  ;;  %v311_v37 = vld [vmem:[%s3563_s1 + $0x300] sm:$0xff]  ;;  %v313_v38 = vld [vmem:[%s3563_s1 + $0x310] sm:$0xff] }
  0x73   : > { %1029 = vmatprep.mubr.f32.mxu1 %v254_v39  ;;  %v316_v39 = vld [vmem:[%s3563_s1 + $0x328] sm:$0xff] }
  0x75   : > { %645 = vmatmul.mubr.f32.gmra.mxu0 %v251_v40  ;;  %v318_v40 = vld [vmem:[%s3563_s1 + $0x338] sm:$0xff] }
  0x76   : > { %1030 = vmatmul.mubr.f32.gmra.mxu1 %v253_v41  ;;  %649 = vmatprep.mubr.f32.mxu0 %v256_v42  ;;  %v315_v41 = vld [vmem:[%s3563_s1 + $0x320] sm:$0xff]  ;;  %v317_v42 = vld [vmem:[%s3563_s1 + $0x330] sm:$0xff] }
  0x77   : > { %1034 = vmatprep.mubr.f32.mxu1 %v258_v43  ;;  %v320_v43 = vld [vmem:[%s3563_s1 + $0x348] sm:$0xff] }
  0x79   : > { %650 = vmatmul.mubr.f32.gmra.mxu0 %v255_v44  ;;  %v322_v44 = vld [vmem:[%s3563_s1 + $0x358] sm:$0xff] }
  0x7a   : > { %1035 = vmatmul.mubr.f32.gmra.mxu1 %v257_v45  ;;  %654 = vmatprep.mubr.f32.mxu0 %v260_v46  ;;  %v319_v45 = vld [vmem:[%s3563_s1 + $0x340] sm:$0xff]  ;;  %v321_v46 = vld [vmem:[%s3563_s1 + $0x350] sm:$0xff] }
  0x7b   : > { %1039 = vmatprep.mubr.f32.mxu1 %v262_v47  ;;  %v324_v47 = vld [vmem:[%s3563_s1 + $0x368] sm:$0xff] }
  0x7d   : > { %655 = vmatmul.mubr.f32.gmra.mxu0 %v259_v48  ;;  %v326_v48 = vld [vmem:[%s3563_s1 + $0x378] sm:$0xff] }
  0x7e   : > { %1040 = vmatmul.mubr.f32.gmra.mxu1 %v261_v49  ;;  %659 = vmatprep.mubr.f32.mxu0 %v264_v50  ;;  %v323_v49 = vld [vmem:[%s3563_s1 + $0x360] sm:$0xff]  ;;  %v325_v50 = vld [vmem:[%s3563_s1 + $0x370] sm:$0xff] }
  0x7f   : > { %1044 = vmatprep.mubr.f32.mxu1 %v266_v51  ;;  %v328_v51 = vld [vmem:[%s3563_s1 + $0x388] sm:$0xff] }
  0x81   : > { %660 = vmatmul.mubr.f32.gmra.mxu0 %v263_v52  ;;  %v330_v52 = vld [vmem:[%s3563_s1 + $0x398] sm:$0xff] }
  0x82   : > { %1045 = vmatmul.mubr.f32.gmra.mxu1 %v265_v53  ;;  %664 = vmatprep.mubr.f32.mxu0 %v268_v54  ;;  %v327_v53 = vld [vmem:[%s3563_s1 + $0x380] sm:$0xff]  ;;  %v329_v54 = vld [vmem:[%s3563_s1 + $0x390] sm:$0xff] }
  0x83   : > { %1049 = vmatprep.mubr.f32.mxu1 %v270_v55  ;;  %v332_v55 = vld [vmem:[%s3563_s1 + $0x3a8] sm:$0xff] }
  0x85   : > { %665 = vmatmul.mubr.f32.gmra.mxu0 %v267_v56  ;;  %v334_v56 = vld [vmem:[%s3563_s1 + $0x3b8] sm:$0xff] }
  0x86   : > { %1050 = vmatmul.mubr.f32.gmra.mxu1 %v269_v57  ;;  %669 = vmatprep.mubr.f32.mxu0 %v272_v58  ;;  %v331_v57 = vld [vmem:[%s3563_s1 + $0x3a0] sm:$0xff]  ;;  %v333_v58 = vld [vmem:[%s3563_s1 + $0x3b0] sm:$0xff] }
  0x87   : > { %1054 = vmatprep.mubr.f32.mxu1 %v274_v59  ;;  %v336_v59 = vld [vmem:[%s3563_s1 + $0x3c8] sm:$0xff] }
  0x89   : > { %670 = vmatmul.mubr.f32.gmra.mxu0 %v271_v60  ;;  %v338_v60 = vld [vmem:[%s3563_s1 + $0x3d8] sm:$0xff] }
  0x8a   : > { %1055 = vmatmul.mubr.f32.gmra.mxu1 %v273_v61  ;;  %674 = vmatprep.mubr.f32.mxu0 %v276_v62  ;;  %v335_v61 = vld [vmem:[%s3563_s1 + $0x3c0] sm:$0xff]  ;;  %v337_v62 = vld [vmem:[%s3563_s1 + $0x3d0] sm:$0xff] }
  0x8b   : > { %1059 = vmatprep.mubr.f32.mxu1 %v278_v63  ;;  %v340_v63 = vld [vmem:[%s3563_s1 + $0x3e8] sm:$0xff] }
  0x8d   : > { %675 = vmatmul.mubr.f32.gmra.mxu0 %v275_v0  ;;  %v342_v0 = vld [vmem:[%s3563_s1 + $0x3f8] sm:$0xff] }
  0x8e   : > { %1060 = vmatmul.mubr.f32.gmra.mxu1 %v277_v1  ;;  %679 = vmatprep.mubr.f32.mxu0 %v280_v3  ;;  %v339_v1 = vld [vmem:[%s3563_s1 + $0x3e0] sm:$0xff]  ;;  %v341_v3 = vld [vmem:[%s3563_s1 + $0x3f0] sm:$0xff] }
  0x8f   : > { %1064 = vmatprep.mubr.f32.mxu1 %v282_v4  ;;  %v344_v4 = vld [vmem:[%s3563_s1 + $0x408] sm:$0xff] }
  0x91   : > { %680 = vmatmul.mubr.f32.gmra.mxu0 %v279_v5  ;;  %v346_v5 = vld [vmem:[%s3563_s1 + $0x418] sm:$0xff] }
  0x92   : > { %1065 = vmatmul.mubr.f32.gmra.mxu1 %v281_v6  ;;  %684 = vmatprep.mubr.f32.mxu0 %v284_v7  ;;  %v343_v6 = vld [vmem:[%s3563_s1 + $0x400] sm:$0xff]  ;;  %v345_v7 = vld [vmem:[%s3563_s1 + $0x410] sm:$0xff] }
  0x93   : > { %1069 = vmatprep.mubr.f32.mxu1 %v286_v8  ;;  %v348_v8 = vld [vmem:[%s3563_s1 + $0x428] sm:$0xff] }
  0x95   : > { %685 = vmatmul.mubr.f32.gmra.mxu0 %v283_v9  ;;  %v350_v9 = vld [vmem:[%s3563_s1 + $0x438] sm:$0xff] }
  0x96   : > { %1070 = vmatmul.mubr.f32.gmra.mxu1 %v285_v10  ;;  %689 = vmatprep.mubr.f32.mxu0 %v288_v11  ;;  %v347_v10 = vld [vmem:[%s3563_s1 + $0x420] sm:$0xff]  ;;  %v349_v11 = vld [vmem:[%s3563_s1 + $0x430] sm:$0xff] }
  0x97   : > { %1074 = vmatprep.mubr.f32.mxu1 %v290_v12  ;;  %v352_v12 = vld [vmem:[%s3563_s1 + $0x448] sm:$0xff] }
  0x99   : > { %690 = vmatmul.mubr.f32.gmra.mxu0 %v287_v13  ;;  %v354_v13 = vld [vmem:[%s3563_s1 + $0x458] sm:$0xff] }
  0x9a   : > { %1075 = vmatmul.mubr.f32.gmra.mxu1 %v289_v14  ;;  %694 = vmatprep.mubr.f32.mxu0 %v292_v15  ;;  %v351_v14 = vld [vmem:[%s3563_s1 + $0x440] sm:$0xff]  ;;  %v353_v15 = vld [vmem:[%s3563_s1 + $0x450] sm:$0xff] }
  0x9b   : > { %1079 = vmatprep.mubr.f32.mxu1 %v294_v16  ;;  %v356_v16 = vld [vmem:[%s3563_s1 + $0x468] sm:$0xff] }
  0x9d   : > { %695 = vmatmul.mubr.f32.gmra.mxu0 %v291_v17  ;;  %v358_v17 = vld [vmem:[%s3563_s1 + $0x478] sm:$0xff] }
  0x9e   : > { %1080 = vmatmul.mubr.f32.gmra.mxu1 %v293_v18  ;;  %699 = vmatprep.mubr.f32.mxu0 %v296_v19  ;;  %v355_v18 = vld [vmem:[%s3563_s1 + $0x460] sm:$0xff]  ;;  %v357_v19 = vld [vmem:[%s3563_s1 + $0x470] sm:$0xff] }
  0x9f   : > { %1084 = vmatprep.mubr.f32.mxu1 %v298_v20  ;;  %v360_v20 = vld [vmem:[%s3563_s1 + $0x488] sm:$0xff] }
  0xa1   : > { %700 = vmatmul.mubr.f32.gmra.mxu0 %v295_v21  ;;  %v362_v21 = vld [vmem:[%s3563_s1 + $0x498] sm:$0xff] }
  0xa2   : > { %1085 = vmatmul.mubr.f32.gmra.mxu1 %v297_v22  ;;  %704 = vmatprep.mubr.f32.mxu0 %v300_v23  ;;  %v359_v22 = vld [vmem:[%s3563_s1 + $0x480] sm:$0xff]  ;;  %v361_v23 = vld [vmem:[%s3563_s1 + $0x490] sm:$0xff] }
  0xa3   : > { %1089 = vmatprep.mubr.f32.mxu1 %v302_v24  ;;  %v364_v24 = vld [vmem:[%s3563_s1 + $0x4a8] sm:$0xff] }
  0xa5   : > { %705 = vmatmul.mubr.f32.gmra.mxu0 %v299_v25  ;;  %v366_v25 = vld [vmem:[%s3563_s1 + $0x4b8] sm:$0xff] }
  0xa6   : > { %1090 = vmatmul.mubr.f32.gmra.mxu1 %v301_v26  ;;  %709 = vmatprep.mubr.f32.mxu0 %v304_v27  ;;  %v363_v26 = vld [vmem:[%s3563_s1 + $0x4a0] sm:$0xff]  ;;  %v365_v27 = vld [vmem:[%s3563_s1 + $0x4b0] sm:$0xff] }
  0xa7   : > { %1094 = vmatprep.mubr.f32.mxu1 %v306_v28  ;;  %v368_v28 = vld [vmem:[%s3563_s1 + $0x4c8] sm:$0xff] }
  0xa9   : > { %710 = vmatmul.mubr.f32.gmra.mxu0 %v303_v29  ;;  %v370_v29 = vld [vmem:[%s3563_s1 + $0x4d8] sm:$0xff] }
  0xaa   : > { %1095 = vmatmul.mubr.f32.gmra.mxu1 %v305_v30  ;;  %714 = vmatprep.mubr.f32.mxu0 %v308_v31  ;;  %v367_v30 = vld [vmem:[%s3563_s1 + $0x4c0] sm:$0xff]  ;;  %v369_v31 = vld [vmem:[%s3563_s1 + $0x4d0] sm:$0xff] }
  0xab   : > { %1099 = vmatprep.mubr.f32.mxu1 %v310_v32  ;;  %v372_v32 = vld [vmem:[%s3563_s1 + $0x4e8] sm:$0xff] }
  0xad   : > { %715 = vmatmul.mubr.f32.gmra.mxu0 %v307_v33  ;;  %v374_v33 = vld [vmem:[%s3563_s1 + $0x4f8] sm:$0xff] }
  0xae   : > { %1100 = vmatmul.mubr.f32.gmra.mxu1 %v309_v34  ;;  %719 = vmatprep.mubr.f32.mxu0 %v312_v35  ;;  %v371_v34 = vld [vmem:[%s3563_s1 + $0x4e0] sm:$0xff]  ;;  %v373_v35 = vld [vmem:[%s3563_s1 + $0x4f0] sm:$0xff] }
  0xaf   : > { %1104 = vmatprep.mubr.f32.mxu1 %v314_v36  ;;  %v376_v36 = vld [vmem:[%s3563_s1 + $0x508] sm:$0xff] }
  0xb1   : > { %720 = vmatmul.mubr.f32.gmra.mxu0 %v311_v37  ;;  %v378_v37 = vld [vmem:[%s3563_s1 + $0x518] sm:$0xff] }
  0xb2   : > { %1105 = vmatmul.mubr.f32.gmra.mxu1 %v313_v38  ;;  %724 = vmatprep.mubr.f32.mxu0 %v316_v39  ;;  %v375_v38 = vld [vmem:[%s3563_s1 + $0x500] sm:$0xff]  ;;  %v377_v39 = vld [vmem:[%s3563_s1 + $0x510] sm:$0xff] }
  0xb3   : > { %1109 = vmatprep.mubr.f32.mxu1 %v318_v40  ;;  %v380_v40 = vld [vmem:[%s3563_s1 + $0x528] sm:$0xff] }
  0xb5   : > { %725 = vmatmul.mubr.f32.gmra.mxu0 %v315_v41  ;;  %v382_v41 = vld [vmem:[%s3563_s1 + $0x538] sm:$0xff] }
  0xb6   : > { %1110 = vmatmul.mubr.f32.gmra.mxu1 %v317_v42  ;;  %729 = vmatprep.mubr.f32.mxu0 %v320_v43  ;;  %v379_v42 = vld [vmem:[%s3563_s1 + $0x520] sm:$0xff]  ;;  %v381_v43 = vld [vmem:[%s3563_s1 + $0x530] sm:$0xff] }
  0xb7   : > { %1114 = vmatprep.mubr.f32.mxu1 %v322_v44  ;;  %v384_v44 = vld [vmem:[%s3563_s1 + $0x548] sm:$0xff] }
  0xb9   : > { %730 = vmatmul.mubr.f32.gmra.mxu0 %v319_v45  ;;  %v386_v45 = vld [vmem:[%s3563_s1 + $0x558] sm:$0xff] }
  0xba   : > { %1115 = vmatmul.mubr.f32.gmra.mxu1 %v321_v46  ;;  %734 = vmatprep.mubr.f32.mxu0 %v324_v47  ;;  %v383_v46 = vld [vmem:[%s3563_s1 + $0x540] sm:$0xff]  ;;  %v385_v47 = vld [vmem:[%s3563_s1 + $0x550] sm:$0xff] }
  0xbb   : > { %1119 = vmatprep.mubr.f32.mxu1 %v326_v48  ;;  %v388_v48 = vld [vmem:[%s3563_s1 + $0x568] sm:$0xff] }
  0xbd   : > { %735 = vmatmul.mubr.f32.gmra.mxu0 %v323_v49  ;;  %v390_v49 = vld [vmem:[%s3563_s1 + $0x578] sm:$0xff] }
  0xbe   : > { %1120 = vmatmul.mubr.f32.gmra.mxu1 %v325_v50  ;;  %739 = vmatprep.mubr.f32.mxu0 %v328_v51  ;;  %v387_v50 = vld [vmem:[%s3563_s1 + $0x560] sm:$0xff]  ;;  %v389_v51 = vld [vmem:[%s3563_s1 + $0x570] sm:$0xff] }
  0xbf   : > { %1124 = vmatprep.mubr.f32.mxu1 %v330_v52  ;;  %v392_v52 = vld [vmem:[%s3563_s1 + $0x588] sm:$0xff] }
  0xc1   : > { %740 = vmatmul.mubr.f32.gmra.mxu0 %v327_v53  ;;  %v394_v53 = vld [vmem:[%s3563_s1 + $0x598] sm:$0xff] }
  0xc2   : > { %1125 = vmatmul.mubr.f32.gmra.mxu1 %v329_v54  ;;  %744 = vmatprep.mubr.f32.mxu0 %v332_v55  ;;  %v391_v54 = vld [vmem:[%s3563_s1 + $0x580] sm:$0xff]  ;;  %v393_v55 = vld [vmem:[%s3563_s1 + $0x590] sm:$0xff] }
  0xc3   : > { %1129 = vmatprep.mubr.f32.mxu1 %v334_v56  ;;  %v396_v56 = vld [vmem:[%s3563_s1 + $0x5a8] sm:$0xff] }
  0xc5   : > { %745 = vmatmul.mubr.f32.gmra.mxu0 %v331_v57  ;;  %v398_v57 = vld [vmem:[%s3563_s1 + $0x5b8] sm:$0xff] }
  0xc6   : > { %1130 = vmatmul.mubr.f32.gmra.mxu1 %v333_v58  ;;  %749 = vmatprep.mubr.f32.mxu0 %v336_v59  ;;  %v395_v58 = vld [vmem:[%s3563_s1 + $0x5a0] sm:$0xff]  ;;  %v397_v59 = vld [vmem:[%s3563_s1 + $0x5b0] sm:$0xff] }
  0xc7   : > { %1134 = vmatprep.mubr.f32.mxu1 %v338_v60  ;;  %v400_v60 = vld [vmem:[%s3563_s1 + $0x5c8] sm:$0xff] }
  0xc9   : > { %750 = vmatmul.mubr.f32.gmra.mxu0 %v335_v61  ;;  %v402_v61 = vld [vmem:[%s3563_s1 + $0x5d8] sm:$0xff] }
  0xca   : > { %1135 = vmatmul.mubr.f32.gmra.mxu1 %v337_v62  ;;  %754 = vmatprep.mubr.f32.mxu0 %v340_v63  ;;  %v399_v62 = vld [vmem:[%s3563_s1 + $0x5c0] sm:$0xff]  ;;  %v401_v63 = vld [vmem:[%s3563_s1 + $0x5d0] sm:$0xff] }
  0xcb   : > { %1139 = vmatprep.mubr.f32.mxu1 %v342_v0  ;;  %v404_v0 = vld [vmem:[%s3563_s1 + $0x5e8] sm:$0xff] }
  0xcd   : > { %755 = vmatmul.mubr.f32.gmra.mxu0 %v339_v1  ;;  %v406_v1 = vld [vmem:[%s3563_s1 + $0x5f8] sm:$0xff] }
  0xce   : > { %1140 = vmatmul.mubr.f32.gmra.mxu1 %v341_v3  ;;  %759 = vmatprep.mubr.f32.mxu0 %v344_v4  ;;  %v403_v3 = vld [vmem:[%s3563_s1 + $0x5e0] sm:$0xff]  ;;  %v405_v4 = vld [vmem:[%s3563_s1 + $0x5f0] sm:$0xff] }
  0xcf   : > { %1144 = vmatprep.mubr.f32.mxu1 %v346_v5  ;;  %v408_v5 = vld [vmem:[%s3563_s1 + $0x608] sm:$0xff] }
  0xd1   : > { %760 = vmatmul.mubr.f32.gmra.mxu0 %v343_v6  ;;  %v410_v6 = vld [vmem:[%s3563_s1 + $0x618] sm:$0xff] }
  0xd2   : > { %1145 = vmatmul.mubr.f32.gmra.mxu1 %v345_v7  ;;  %764 = vmatprep.mubr.f32.mxu0 %v348_v8  ;;  %v407_v7 = vld [vmem:[%s3563_s1 + $0x600] sm:$0xff]  ;;  %v409_v8 = vld [vmem:[%s3563_s1 + $0x610] sm:$0xff] }
  0xd3   : > { %1149 = vmatprep.mubr.f32.mxu1 %v350_v9  ;;  %v412_v9 = vld [vmem:[%s3563_s1 + $0x628] sm:$0xff] }
  0xd5   : > { %765 = vmatmul.mubr.f32.gmra.mxu0 %v347_v10  ;;  %v414_v10 = vld [vmem:[%s3563_s1 + $0x638] sm:$0xff] }
  0xd6   : > { %1150 = vmatmul.mubr.f32.gmra.mxu1 %v349_v11  ;;  %769 = vmatprep.mubr.f32.mxu0 %v352_v12 }
  0xd7   : > { %1154 = vmatprep.mubr.f32.mxu1 %v354_v13 }
  0xd9   : > { %770 = vmatmul.mubr.f32.gmra.mxu0 %v351_v14  ;;  %v411_v14 = vld [vmem:[%s3563_s1 + $0x620] sm:$0xff] }
  0xda   : > { %1155 = vmatmul.mubr.f32.gmra.mxu1 %v353_v15  ;;  %774 = vmatprep.mubr.f32.mxu0 %v356_v16  ;;  %v413_v15 = vld [vmem:[%s3563_s1 + $0x630] sm:$0xff] }
  0xdb   : > { %1159 = vmatprep.mubr.f32.mxu1 %v358_v17 }
  0xdd   : > { %775 = vmatmul.mubr.f32.gmra.mxu0 %v355_v18  ;;  %v416_v18 = vld [vmem:[%s3563_s1 + $0x648] sm:$0xff] }
  0xde   : > { %1160 = vmatmul.mubr.f32.gmra.mxu1 %v357_v19  ;;  %779 = vmatprep.mubr.f32.mxu0 %v360_v20  ;;  %v418_v19 = vld [vmem:[%s3563_s1 + $0x658] sm:$0xff] }
  0xdf   : > { %1164 = vmatprep.mubr.f32.mxu1 %v362_v21 }
  0xe1   : > { %780 = vmatmul.mubr.f32.gmra.mxu0 %v359_v22 }
  0xe2   : > { %1165 = vmatmul.mubr.f32.gmra.mxu1 %v361_v23  ;;  %784 = vmatprep.mubr.f32.mxu0 %v364_v24  ;;  %v415_v23 = vld [vmem:[%s3563_s1 + $0x640] sm:$0xff]  ;;  %v417_v24 = vld [vmem:[%s3563_s1 + $0x650] sm:$0xff] }
  0xe3   : > { %1169 = vmatprep.mubr.f32.mxu1 %v366_v25 }
  0xe5   : > { %785 = vmatmul.mubr.f32.gmra.mxu0 %v363_v26 }
  0xe6   : > { %1170 = vmatmul.mubr.f32.gmra.mxu1 %v365_v27  ;;  %789 = vmatprep.mubr.f32.mxu0 %v368_v28  ;;  %v420_v27 = vld [vmem:[%s3563_s1 + $0x668] sm:$0xff]  ;;  %v422_v28 = vld [vmem:[%s3563_s1 + $0x678] sm:$0xff] }
  0xe7   : > { %1174 = vmatprep.mubr.f32.mxu1 %v370_v29 }
  0xe9   : > { %790 = vmatmul.mubr.f32.gmra.mxu0 %v367_v30 }
  0xea   : > { %1175 = vmatmul.mubr.f32.gmra.mxu1 %v369_v31  ;;  %794 = vmatprep.mubr.f32.mxu0 %v372_v32  ;;  %v419_v32 = vld [vmem:[%s3563_s1 + $0x660] sm:$0xff] }
  0xeb   : > { %1179 = vmatprep.mubr.f32.mxu1 %v374_v33  ;;  %v421_v33 = vld [vmem:[%s3563_s1 + $0x670] sm:$0xff] }
  0xed   : > { %795 = vmatmul.mubr.f32.gmra.mxu0 %v371_v34 }
  0xee   : > { %1180 = vmatmul.mubr.f32.gmra.mxu1 %v373_v35  ;;  %799 = vmatprep.mubr.f32.mxu0 %v376_v36  ;;  %v424_v36 = vld [vmem:[%s3563_s1 + $0x688] sm:$0xff] }
  0xef   : > { %1184 = vmatprep.mubr.f32.mxu1 %v378_v37  ;;  %v426_v37 = vld [vmem:[%s3563_s1 + $0x698] sm:$0xff] }
  0xf1   : > { %800 = vmatmul.mubr.f32.gmra.mxu0 %v375_v38 }
  0xf2   : > { %1185 = vmatmul.mubr.f32.gmra.mxu1 %v377_v39  ;;  %804 = vmatprep.mubr.f32.mxu0 %v380_v40 }
  0xf3   : > { %1189 = vmatprep.mubr.f32.mxu1 %v382_v41  ;;  %v423_v41 = vld [vmem:[%s3563_s1 + $0x680] sm:$0xff] }
  0xf5   : > { %805 = vmatmul.mubr.f32.gmra.mxu0 %v379_v42  ;;  %v425_v42 = vld [vmem:[%s3563_s1 + $0x690] sm:$0xff] }
  0xf6   : > { %1190 = vmatmul.mubr.f32.gmra.mxu1 %v381_v43  ;;  %809 = vmatprep.mubr.f32.mxu0 %v384_v44 }
  0xf7   : > { %1194 = vmatprep.mubr.f32.mxu1 %v386_v45  ;;  %v428_v45 = vld [vmem:[%s3563_s1 + $0x6a8] sm:$0xff] }
  0xf9   : > { %810 = vmatmul.mubr.f32.gmra.mxu0 %v383_v46  ;;  %v430_v46 = vld [vmem:[%s3563_s1 + $0x6b8] sm:$0xff] }
  0xfa   : > { %1195 = vmatmul.mubr.f32.gmra.mxu1 %v385_v47  ;;  %814 = vmatprep.mubr.f32.mxu0 %v388_v48 }
  0xfb   : > { %1199 = vmatprep.mubr.f32.mxu1 %v390_v49 }
  0xfd   : > { %815 = vmatmul.mubr.f32.gmra.mxu0 %v387_v50  ;;  %v427_v50 = vld [vmem:[%s3563_s1 + $0x6a0] sm:$0xff] }
  0xfe   : > { %1200 = vmatmul.mubr.f32.gmra.mxu1 %v389_v51  ;;  %819 = vmatprep.mubr.f32.mxu0 %v392_v52  ;;  %v429_v51 = vld [vmem:[%s3563_s1 + $0x6b0] sm:$0xff] }
  0xff   : > { %1204 = vmatprep.mubr.f32.mxu1 %v394_v53 }
 0x101   : > { %820 = vmatmul.mubr.f32.gmra.mxu0 %v391_v54  ;;  %v432_v54 = vld [vmem:[%s3563_s1 + $0x6c8] sm:$0xff] }
 0x102   : > { %1205 = vmatmul.mubr.f32.gmra.mxu1 %v393_v55  ;;  %824 = vmatprep.mubr.f32.mxu0 %v396_v56  ;;  %v434_v55 = vld [vmem:[%s3563_s1 + $0x6d8] sm:$0xff] }
 0x103   : > { %1209 = vmatprep.mubr.f32.mxu1 %v398_v57 }
 0x105   : > { %825 = vmatmul.mubr.f32.gmra.mxu0 %v395_v58 }
 0x106   : > { %1210 = vmatmul.mubr.f32.gmra.mxu1 %v397_v59  ;;  %829 = vmatprep.mubr.f32.mxu0 %v400_v60  ;;  %v431_v59 = vld [vmem:[%s3563_s1 + $0x6c0] sm:$0xff]  ;;  %v433_v60 = vld [vmem:[%s3563_s1 + $0x6d0] sm:$0xff] }
 0x107   : > { %1214 = vmatprep.mubr.f32.mxu1 %v402_v61 }
 0x109   : > { %830 = vmatmul.mubr.f32.gmra.mxu0 %v399_v62 }
 0x10a   : > { %1215 = vmatmul.mubr.f32.gmra.mxu1 %v401_v63  ;;  %834 = vmatprep.mubr.f32.mxu0 %v404_v0  ;;  %v436_v63 = vld [vmem:[%s3563_s1 + $0x6e8] sm:$0xff]  ;;  %v438_v0 = vld [vmem:[%s3563_s1 + $0x6f8] sm:$0xff] }
 0x10b   : > { %1219 = vmatprep.mubr.f32.mxu1 %v406_v1 }
 0x10d   : > { %835 = vmatmul.mubr.f32.gmra.mxu0 %v403_v3 }
 0x10e   : > { %1220 = vmatmul.mubr.f32.gmra.mxu1 %v405_v4  ;;  %839 = vmatprep.mubr.f32.mxu0 %v408_v5  ;;  %v435_v5 = vld [vmem:[%s3563_s1 + $0x6e0] sm:$0xff] }
 0x10f   : > { %1224 = vmatprep.mubr.f32.mxu1 %v410_v6  ;;  %v437_v6 = vld [vmem:[%s3563_s1 + $0x6f0] sm:$0xff] }
 0x111   : > { %v601_v11 = vpop.f32.mrf.mxu0  ;;  %840 = vmatmul.mubr.f32.gmra.mxu0 %v407_v7 }
 0x112   : > { %v986_v12 = vpop.f32.mrf.mxu1  ;;  %1225 = vmatmul.mubr.f32.gmra.mxu1 %v409_v8  ;;  %844 = vmatprep.mubr.f32.mxu0 %v412_v9  ;;  %v440_v9 = vld [vmem:[%s3563_s1 + $0x708] sm:$0xff] }
 0x113   : > { %v3019_v13 = vadd.f32 %v986_v12, %v601_v11  ;;  %1229 = vmatprep.mubr.f32.mxu1 %v414_v10  ;;  %v603_v16 = vpop.f32.mrf.mxu0  ;;  %v442_v10 = vld [vmem:[%s3563_s1 + $0x718] sm:$0xff] }
 0x114   : > { %v988_v17 = vpop.f32.mrf.mxu1  ;;  %v441_v16 = vld [vmem:[%s3563_s1 + $0x710] sm:$0xff] }
 0x115   : > { %v606_v20 = vpop.f32.mrf.mxu0  ;;  %845 = vmatmul.mubr.f32.gmra.mxu0 %v411_v14 }
 0x116   : > { %v991_v21 = vpop.f32.mrf.mxu1  ;;  %1230 = vmatmul.mubr.f32.gmra.mxu1 %v413_v15  ;;  %849 = vmatprep.mubr.f32.mxu0 %v416_v18  ;;  %v439_v15 = vld [vmem:[%s3563_s1 + $0x700] sm:$0xff] }
 0x117   : > { %v3033_v22 = vadd.f32 %v991_v21, %v606_v20  ;;  %1234 = vmatprep.mubr.f32.mxu1 %v418_v19  ;;  %v608_v25 = vpop.f32.mrf.mxu0  ;;  %v444_v19 = vld [vmem:[%s3563_s1 + $0x728] sm:$0xff]  ;;  %v446_v20 = vld [vmem:[%s3563_s1 + $0x738] sm:$0xff] }
 0x118   : > { %v993_v26 = vpop.f32.mrf.mxu1  ;;  %v443_v25 = vld [vmem:[%s3563_s1 + $0x720] sm:$0xff] }
 0x119   : > { %v611_v29 = vpop.f32.mrf.mxu0  ;;  %850 = vmatmul.mubr.f32.gmra.mxu0 %v415_v23  ;;  %v445_v26 = vld [vmem:[%s3563_s1 + $0x730] sm:$0xff] }
 0x11a   : > { %v996_v30 = vpop.f32.mrf.mxu1  ;;  %1235 = vmatmul.mubr.f32.gmra.mxu1 %v417_v24  ;;  %854 = vmatprep.mubr.f32.mxu0 %v420_v27 }
 0x11b   : > { %v3047_v31 = vadd.f32 %v996_v30, %v611_v29  ;;  %1239 = vmatprep.mubr.f32.mxu1 %v422_v28  ;;  %v613_v34 = vpop.f32.mrf.mxu0  ;;  %v448_v29 = vld [vmem:[%s3563_s1 + $0x748] sm:$0xff]  ;;  %v450_v30 = vld [vmem:[%s3563_s1 + $0x758] sm:$0xff] }
 0x11c   : > { %v998_v35 = vpop.f32.mrf.mxu1 }
 0x11d   : > { %v616_v38 = vpop.f32.mrf.mxu0  ;;  %855 = vmatmul.mubr.f32.gmra.mxu0 %v419_v32  ;;  %v447_v35 = vld [vmem:[%s3563_s1 + $0x740] sm:$0xff] }
 0x11e   : > { %v1001_v39 = vpop.f32.mrf.mxu1  ;;  %1240 = vmatmul.mubr.f32.gmra.mxu1 %v421_v33  ;;  %859 = vmatprep.mubr.f32.mxu0 %v424_v36  ;;  %v449_v36 = vld [vmem:[%s3563_s1 + $0x750] sm:$0xff] }
 0x11f   : > { %v3061_v40 = vadd.f32 %v1001_v39, %v616_v38  ;;  %1244 = vmatprep.mubr.f32.mxu1 %v426_v37  ;;  %v618_v43 = vpop.f32.mrf.mxu0  ;;  %v452_v39 = vld [vmem:[%s3563_s1 + $0x768] sm:$0xff] }
 0x120   : > { %v1003_v44 = vpop.f32.mrf.mxu1 }
 0x121   : > { %v621_v47 = vpop.f32.mrf.mxu0  ;;  %860 = vmatmul.mubr.f32.gmra.mxu0 %v423_v41  ;;  %v454_v41 = vld [vmem:[%s3563_s1 + $0x778] sm:$0xff] }
 0x122   : > { %v1006_v48 = vpop.f32.mrf.mxu1  ;;  %1245 = vmatmul.mubr.f32.gmra.mxu1 %v425_v42  ;;  %864 = vmatprep.mubr.f32.mxu0 %v428_v45  ;;  %v451_v45 = vld [vmem:[%s3563_s1 + $0x760] sm:$0xff] }
 0x123   : > { %v3075_v49 = vadd.f32 %v1006_v48, %v621_v47  ;;  %1249 = vmatprep.mubr.f32.mxu1 %v430_v46  ;;  %v623_v52 = vpop.f32.mrf.mxu0  ;;  %v453_v46 = vld [vmem:[%s3563_s1 + $0x770] sm:$0xff] }
 0x124   : > { %v1008_v53 = vpop.f32.mrf.mxu1 }
 0x125   : > { %v626_v56 = vpop.f32.mrf.mxu0  ;;  %865 = vmatmul.mubr.f32.gmra.mxu0 %v427_v50  ;;  %v456_v50 = vld [vmem:[%s3563_s1 + $0x788] sm:$0xff] }
 0x126   : > { %v1011_v57 = vpop.f32.mrf.mxu1  ;;  %1250 = vmatmul.mubr.f32.gmra.mxu1 %v429_v51  ;;  %869 = vmatprep.mubr.f32.mxu0 %v432_v54  ;;  %v458_v51 = vld [vmem:[%s3563_s1 + $0x798] sm:$0xff] }
 0x127   : > { %v3089_v58 = vadd.f32 %v1011_v57, %v626_v56  ;;  %1254 = vmatprep.mubr.f32.mxu1 %v434_v55  ;;  %v628_v61 = vpop.f32.mrf.mxu0  ;;  %v455_v55 = vld [vmem:[%s3563_s1 + $0x780] sm:$0xff]  ;;  %v457_v56 = vld [vmem:[%s3563_s1 + $0x790] sm:$0xff] }
 0x128   : > { %v1013_v62 = vpop.f32.mrf.mxu1  ;;  %v462_v61 = vld [vmem:[%s3563_s1 + $0x7b8] sm:$0xff] }
 0x129   : > { %v631_v1 = vpop.f32.mrf.mxu0  ;;  %870 = vmatmul.mubr.f32.gmra.mxu0 %v431_v59 }
 0x12a   : > { %v1016_v3 = vpop.f32.mrf.mxu1  ;;  %1255 = vmatmul.mubr.f32.gmra.mxu1 %v433_v60  ;;  %874 = vmatprep.mubr.f32.mxu0 %v436_v63  ;;  %v460_v60 = vld [vmem:[%s3563_s1 + $0x7a8] sm:$0xff] }
 0x12b   : > { %v3103_v4 = vadd.f32 %v1016_v3, %v631_v1  ;;  %1259 = vmatprep.mubr.f32.mxu1 %v438_v0  ;;  %v633_v7 = vpop.f32.mrf.mxu0  ;;  %v459_v1 = vld [vmem:[%s3563_s1 + $0x7a0] sm:$0xff]  ;;  %v461_v3 = vld [vmem:[%s3563_s1 + $0x7b0] sm:$0xff] }
 0x12c   : > { %v1018_v8 = vpop.f32.mrf.mxu1  ;;  %v464_v7 = vld [vmem:[%s3563_s1 + $0x7c8] sm:$0xff] }
 0x12d   : > { %v636_v11 = vpop.f32.mrf.mxu0  ;;  %875 = vmatmul.mubr.f32.gmra.mxu0 %v435_v5  ;;  %v466_v8 = vld [vmem:[%s3563_s1 + $0x7d8] sm:$0xff] }
 0x12e   : > { %v1021_v12 = vpop.f32.mrf.mxu1  ;;  %1260 = vmatmul.mubr.f32.gmra.mxu1 %v437_v6  ;;  %879 = vmatprep.mubr.f32.mxu0 %v440_v9 }
 0x12f   : > { %v3117_v14 = vadd.f32 %v1021_v12, %v636_v11  ;;  %1264 = vmatprep.mubr.f32.mxu1 %v442_v10  ;;  %v638_v17 = vpop.f32.mrf.mxu0  ;;  %v463_v12 = vld [vmem:[%s3563_s1 + $0x7c0] sm:$0xff] }
 0x130   : > { %v1023_v18 = vpop.f32.mrf.mxu1 }
 0x131   : > { %v641_v21 = vpop.f32.mrf.mxu0  ;;  %880 = vmatmul.mubr.f32.gmra.mxu0 %v439_v15  ;;  %v465_v15 = vld [vmem:[%s3563_s1 + $0x7d0] sm:$0xff]  ;;  %v468_v18 = vld [vmem:[%s3563_s1 + $0x7e8] sm:$0xff] }
 0x132   : > { %v1026_v23 = vpop.f32.mrf.mxu1  ;;  %1265 = vmatmul.mubr.f32.gmra.mxu1 %v441_v16  ;;  %884 = vmatprep.mubr.f32.mxu0 %v444_v19  ;;  %v470_v19 = vld [vmem:[%s3563_s1 + $0x7f8] sm:$0xff] }
 0x133   : > { %v3131_v24 = vadd.f32 %v1026_v23, %v641_v21  ;;  %1269 = vmatprep.mubr.f32.mxu1 %v446_v20  ;;  %v643_v27 = vpop.f32.mrf.mxu0 }
 0x134   : > { %v1028_v28 = vpop.f32.mrf.mxu1 }
 0x135   : > { %v646_v32 = vpop.f32.mrf.mxu0  ;;  %885 = vmatmul.mubr.f32.gmra.mxu0 %v443_v25  ;;  %v467_v25 = vld [vmem:[%s3563_s1 + $0x7e0] sm:$0xff] }
 0x136   : > { %v1031_v33 = vpop.f32.mrf.mxu1  ;;  %1270 = vmatmul.mubr.f32.gmra.mxu1 %v445_v26  ;;  %889 = vmatprep.mubr.f32.mxu0 %v448_v29  ;;  %v469_v26 = vld [vmem:[%s3563_s1 + $0x7f0] sm:$0xff] }
 0x137   : > { %v3145_v34 = vadd.f32 %v1031_v33, %v646_v32  ;;  %1274 = vmatprep.mubr.f32.mxu1 %v450_v30  ;;  %v648_v37 = vpop.f32.mrf.mxu0 }
 0x138   : > { %v1033_v38 = vpop.f32.mrf.mxu1 }
 0x139   : > { %v651_v42 = vpop.f32.mrf.mxu0  ;;  %890 = vmatmul.mubr.f32.gmra.mxu0 %v447_v35 }
 0x13a   : > { %v1036_v43 = vpop.f32.mrf.mxu1  ;;  %1275 = vmatmul.mubr.f32.gmra.mxu1 %v449_v36  ;;  %894 = vmatprep.mubr.f32.mxu0 %v452_v39 }
 0x13b   : > { %v3159_v44 = vadd.f32 %v1036_v43, %v651_v42  ;;  %1279 = vmatprep.mubr.f32.mxu1 %v454_v41  ;;  %v653_v47 = vpop.f32.mrf.mxu0 }
 0x13c   : > { %v1038_v48 = vpop.f32.mrf.mxu1 }
 0x13d   : > { %v656_v52 = vpop.f32.mrf.mxu0  ;;  %895 = vmatmul.mubr.f32.gmra.mxu0 %v451_v45 }
 0x13e   : > { %v1041_v53 = vpop.f32.mrf.mxu1  ;;  %1280 = vmatmul.mubr.f32.gmra.mxu1 %v453_v46  ;;  %899 = vmatprep.mubr.f32.mxu0 %v456_v50 }
 0x13f   : > { %v3173_v54 = vadd.f32 %v1041_v53, %v656_v52  ;;  %1284 = vmatprep.mubr.f32.mxu1 %v458_v51  ;;  %v658_v57 = vpop.f32.mrf.mxu0 }
 0x140   : > { %v1043_v59 = vpop.f32.mrf.mxu1 }
 0x141   : > { %v661_v62 = vpop.f32.mrf.mxu0  ;;  %900 = vmatmul.mubr.f32.gmra.mxu0 %v455_v55 }
 0x142   : > { %v1046_v63 = vpop.f32.mrf.mxu1  ;;  %1285 = vmatmul.mubr.f32.gmra.mxu1 %v457_v56  ;;  %904 = vmatprep.mubr.f32.mxu0 %v460_v60 }
 0x143   : > { %v3187_v0 = vadd.f32 %v1046_v63, %v661_v62  ;;  %1289 = vmatprep.mubr.f32.mxu1 %v462_v61  ;;  %v663_v5 = vpop.f32.mrf.mxu0 }
 0x144   : > { %v1048_v6 = vpop.f32.mrf.mxu1 }
 0x145   : > { %v666_v9 = vpop.f32.mrf.mxu0  ;;  %905 = vmatmul.mubr.f32.gmra.mxu0 %v459_v1 }
 0x146   : > { %v1051_v10 = vpop.f32.mrf.mxu1  ;;  %1290 = vmatmul.mubr.f32.gmra.mxu1 %v461_v3  ;;  %909 = vmatprep.mubr.f32.mxu0 %v464_v7 }
 0x147   : > { %v3201_v11 = vadd.f32 %v1051_v10, %v666_v9  ;;  %1294 = vmatprep.mubr.f32.mxu1 %v466_v8  ;;  %v668_v16 = vpop.f32.mrf.mxu0 }
 0x148   : > { %v1053_v17 = vpop.f32.mrf.mxu1 }
 0x149   : > { %v671_v20 = vpop.f32.mrf.mxu0  ;;  %910 = vmatmul.mubr.f32.gmra.mxu0 %v463_v12 }
 0x14a   : > { %v1056_v21 = vpop.f32.mrf.mxu1  ;;  %1295 = vmatmul.mubr.f32.gmra.mxu1 %v465_v15  ;;  %914 = vmatprep.mubr.f32.mxu0 %v468_v18 }
 0x14b   : > { %v3215_v23 = vadd.f32 %v1056_v21, %v671_v20  ;;  %1299 = vmatprep.mubr.f32.mxu1 %v470_v19  ;;  %v673_v27 = vpop.f32.mrf.mxu0 }
 0x14c   : > { %v1058_v28 = vpop.f32.mrf.mxu1 }
 0x14d   : > { %v676_v29 = vpop.f32.mrf.mxu0  ;;  %915 = vmatmul.mubr.f32.gmra.mxu0 %v467_v25 }
 0x14e   : > { %v1061_v30 = vpop.f32.mrf.mxu1  ;;  %1300 = vmatmul.mubr.f32.gmra.mxu1 %v469_v26 }
 0x14f   : > { %v3223_v32 = vadd.f32 %v1061_v30, %v676_v29  ;;  %v678_v33 = vpop.f32.mrf.mxu0 }
 0x150   : > { %v1063_v35 = vpop.f32.mrf.mxu1 }
 0x151   : > { %v681_v36 = vpop.f32.mrf.mxu0 }
 0x152   : > { %v1066_v37 = vpop.f32.mrf.mxu1 }
 0x153   : > { %v3225_v38 = vadd.f32 %v1066_v37, %v681_v36  ;;  %v683_v39 = vpop.f32.mrf.mxu0 }
 0x154   : > { %v1068_v41 = vpop.f32.mrf.mxu1 }
 0x155   : > { %v686_v42 = vpop.f32.mrf.mxu0 }
 0x156   : > { %v1071_v43 = vpop.f32.mrf.mxu1 }
 0x157   : > { %v3227_v45 = vadd.f32 %v1071_v43, %v686_v42  ;;  %v688_v46 = vpop.f32.mrf.mxu0 }
 0x158   : > { %v1073_v47 = vpop.f32.mrf.mxu1 }
 0x159   : > { %v691_v48 = vpop.f32.mrf.mxu0 }
 0x15a   : > { %v1076_v50 = vpop.f32.mrf.mxu1 }
 0x15b   : > { %v3229_v51 = vadd.f32 %v1076_v50, %v691_v48  ;;  %v693_v52 = vpop.f32.mrf.mxu0 }
 0x15c   : > { %v1078_v53 = vpop.f32.mrf.mxu1 }
 0x15d   : > { %v696_v55 = vpop.f32.mrf.mxu0 }
 0x15e   : > { %v1081_v56 = vpop.f32.mrf.mxu1 }
 0x15f   : > { %v3231_v57 = vadd.f32 %v1081_v56, %v696_v55  ;;  %v698_v59 = vpop.f32.mrf.mxu0 }
 0x160   : > { %v1083_v60 = vpop.f32.mrf.mxu1 }
 0x161   : > { %v701_v61 = vpop.f32.mrf.mxu0 }
 0x162   : > { %v1086_v62 = vpop.f32.mrf.mxu1 }
 0x163   : > { %v3233_v63 = vadd.f32 %v1086_v62, %v701_v61  ;;  %v703_v1 = vpop.f32.mrf.mxu0 }
 0x164   : > { %v1088_v3 = vpop.f32.mrf.mxu1 }
 0x165   : > { %v706_v5 = vpop.f32.mrf.mxu0 }
 0x166   : > { %v1091_v6 = vpop.f32.mrf.mxu1 }
 0x167   : > { %v3235_v7 = vadd.f32 %v1091_v6, %v706_v5  ;;  %v708_v8 = vpop.f32.mrf.mxu0 }
 0x168   : > { %v1093_v9 = vpop.f32.mrf.mxu1 }
 0x169   : > { %v711_v10 = vpop.f32.mrf.mxu0 }
 0x16a   : > { %v1096_v12 = vpop.f32.mrf.mxu1 }
 0x16b   : > { %v3237_v15 = vadd.f32 %v1096_v12, %v711_v10  ;;  %v713_v16 = vpop.f32.mrf.mxu0 }
 0x16c   : > { %v1098_v17 = vpop.f32.mrf.mxu1 }
 0x16d   : > { %v716_v18 = vpop.f32.mrf.mxu0 }
 0x16e   : > { %v1101_v19 = vpop.f32.mrf.mxu1 }
 0x16f   : > { %v3239_v20 = vadd.f32 %v1101_v19, %v716_v18  ;;  %v718_v21 = vpop.f32.mrf.mxu0 }
 0x170   : > { %v1103_v25 = vpop.f32.mrf.mxu1 }
 0x171   : > { %v721_v26 = vpop.f32.mrf.mxu0 }
 0x172   : > { %v1106_v27 = vpop.f32.mrf.mxu1 }
 0x173   : > { %v3241_v28 = vadd.f32 %v1106_v27, %v721_v26  ;;  %v723_v29 = vpop.f32.mrf.mxu0 }
 0x174   : > { %v1108_v30 = vpop.f32.mrf.mxu1 }
 0x175   : > { %v726_v33 = vpop.f32.mrf.mxu0 }
 0x176   : > { %v1111_v35 = vpop.f32.mrf.mxu1 }
 0x177   : > { %v3243_v36 = vadd.f32 %v1111_v35, %v726_v33  ;;  %v728_v37 = vpop.f32.mrf.mxu0 }
 0x178   : > { %v1113_v39 = vpop.f32.mrf.mxu1  ;;  %v1305_v37 = vmul.f32 %v3019_v13, %v3019_v13  ;;  %v1307_v13 = vmul.f32 %v3047_v31, %v3047_v31  ;;  %v1309_v31 = vmul.f32 %v3075_v49, %v3075_v49  ;;  %v1311_v49 = vmul.f32 %v3103_v4, %v3103_v4 }
 0x179   : > { %v731_v41 = vpop.f32.mrf.mxu0  ;;  %v1313_v4 = vmul.f32 %v3131_v24, %v3131_v24  ;;  %v1315_v24 = vmul.f32 %v3159_v44, %v3159_v44  ;;  %v1317_v44 = vmul.f32 %v3187_v0, %v3187_v0  ;;  %v1318_v0 = vmul.f32 %v3201_v11, %v3201_v11 }
 0x17a   : > { %v1116_v42 = vpop.f32.mrf.mxu1  ;;  %v1320_v11 = vmul.f32 %v3223_v32, %v3223_v32  ;;  %v1322_v32 = vmul.f32 %v3227_v45, %v3227_v45  ;;  %v1324_v45 = vmul.f32 %v3231_v57, %v3231_v57 }
 0x17b   : > { %v3245_v43 = vadd.f32 %v1116_v42, %v731_v41  ;;  %v733_v46 = vpop.f32.mrf.mxu0 }
 0x17c   : > { %v1118_v47 = vpop.f32.mrf.mxu1 }
 0x17d   : > { %v736_v48 = vpop.f32.mrf.mxu0 }
 0x17e   : > { %v1121_v50 = vpop.f32.mrf.mxu1 }
 0x17f   : > { %v3247_v52 = vadd.f32 %v1121_v50, %v736_v48  ;;  %v738_v53 = vpop.f32.mrf.mxu0 }
 0x180   : > { %v1123_v55 = vpop.f32.mrf.mxu1  ;;  %v1306_v53 = vmul.f32 %v3033_v22, %v3033_v22  ;;  %v1308_v22 = vmul.f32 %v3061_v40, %v3061_v40  ;;  %v1310_v40 = vmul.f32 %v3089_v58, %v3089_v58  ;;  %v1312_v58 = vmul.f32 %v3117_v14, %v3117_v14 }
 0x181   : > { %v741_v56 = vpop.f32.mrf.mxu0  ;;  %v1314_v14 = vmul.f32 %v3145_v34, %v3145_v34  ;;  %v1316_v34 = vmul.f32 %v3173_v54, %v3173_v54  ;;  %v1530_v54 = vld [vmem:[%s3564_s2 + $0x8] sm:$0xff] }
 0x182   : > { %v1126_v59 = vpop.f32.mrf.mxu1  ;;  %1609 = vmatprep.mubr.f32.mxu0 %v1530_v54 }
 0x183   : > { %v3249_v60 = vadd.f32 %v1126_v59, %v741_v56  ;;  %v743_v61 = vpop.f32.mrf.mxu0 }
 0x184   : > { %v1128_v62 = vpop.f32.mrf.mxu1 }
 0x185   : > { %v746_v1 = vpop.f32.mrf.mxu0 }
 0x186   : > { %v1131_v3 = vpop.f32.mrf.mxu1 }
 0x187   : > { %v3251_v5 = vadd.f32 %v1131_v3, %v746_v1  ;;  %v748_v6 = vpop.f32.mrf.mxu0 }
 0x188   : > { %v1133_v8 = vpop.f32.mrf.mxu1 }
 0x189   : > { %v751_v9 = vpop.f32.mrf.mxu0 }
 0x18a   : > { %v1136_v10 = vpop.f32.mrf.mxu1 }
 0x18b   : > { %v3253_v12 = vadd.f32 %v1136_v10, %v751_v9  ;;  %v753_v16 = vpop.f32.mrf.mxu0 }
 0x18c   : > { %v1138_v17 = vpop.f32.mrf.mxu1 }
 0x18d   : > { %v756_v18 = vpop.f32.mrf.mxu0 }
 0x18e   : > { %v1141_v19 = vpop.f32.mrf.mxu1 }
 0x18f   : > { %v3255_v21 = vadd.f32 %v1141_v19, %v756_v18  ;;  %v758_v25 = vpop.f32.mrf.mxu0 }
 0x190   : > { %v1143_v26 = vpop.f32.mrf.mxu1 }
 0x191   : > { %v761_v27 = vpop.f32.mrf.mxu0 }
 0x192   : > { %v1146_v29 = vpop.f32.mrf.mxu1 }
 0x193   : > { %v1147_v30 = vadd.f32 %v1146_v29, %v761_v27  ;;  %v763_v33 = vpop.f32.mrf.mxu0 }
 0x194   : > { %v1148_v35 = vpop.f32.mrf.mxu1 }
 0x195   : > { %v1337_v39 = vmul.f32 %v1147_v30, %v1147_v30  ;;  %v766_v41 = vpop.f32.mrf.mxu0 }
 0x196   : > { %v1151_v42 = vpop.f32.mrf.mxu1 }
 0x197   : > { %v3259_v46 = vadd.f32 %v1337_v39, %v1305_v37  ;;  %v1152_v47 = vadd.f32 %v1151_v42, %v766_v41  ;;  %v768_v48 = vpop.f32.mrf.mxu0 }
 0x198   : > { %v1153_v50 = vpop.f32.mrf.mxu1 }
 0x199   : > { %3568 = vst [vmem:[#allocation4_spill] sm:$0xff] %v3259_v46  ;;  %v1338_v55 = vmul.f32 %v1152_v47, %v1152_v47  ;;  %v771_v56 = vpop.f32.mrf.mxu0 }
 0x19a   : > { %v1156_v59 = vpop.f32.mrf.mxu1 }
 0x19b   : > { %v3263_v61 = vadd.f32 %v1338_v55, %v1306_v53  ;;  %v1157_v62 = vadd.f32 %v1156_v59, %v771_v56  ;;  %v773_v1 = vpop.f32.mrf.mxu0 }
 0x19c   : > { %v1158_v3 = vpop.f32.mrf.mxu1 }
 0x19d   : > { %v1339_v6 = vmul.f32 %v1157_v62, %v1157_v62  ;;  %v776_v8 = vpop.f32.mrf.mxu0 }
 0x19e   : > { %v1161_v9 = vpop.f32.mrf.mxu1 }
 0x19f   : > { %v3267_v10 = vadd.f32 %v1339_v6, %v1307_v13  ;;  %v1162_v16 = vadd.f32 %v1161_v9, %v776_v8  ;;  %v778_v17 = vpop.f32.mrf.mxu0 }
 0x1a0   : > { %v1163_v18 = vpop.f32.mrf.mxu1 }
 0x1a1   : > { %v1340_v19 = vmul.f32 %v1162_v16, %v1162_v16  ;;  %v781_v25 = vpop.f32.mrf.mxu0 }
 0x1a2   : > { %v1166_v26 = vpop.f32.mrf.mxu1 }
 0x1a3   : > { %v3271_v27 = vadd.f32 %v1340_v19, %v1308_v22  ;;  %v1167_v29 = vadd.f32 %v1166_v26, %v781_v25  ;;  %v783_v30 = vpop.f32.mrf.mxu0 }
 0x1a4   : > { %v1168_v33 = vpop.f32.mrf.mxu1 }
 0x1a5   : > { %v1341_v35 = vmul.f32 %v1167_v29, %v1167_v29  ;;  %v786_v37 = vpop.f32.mrf.mxu0 }
 0x1a6   : > { %v1171_v39 = vpop.f32.mrf.mxu1 }
 0x1a7   : > { %v3275_v41 = vadd.f32 %v1341_v35, %v1309_v31  ;;  %v1172_v42 = vadd.f32 %v1171_v39, %v786_v37  ;;  %v788_v47 = vpop.f32.mrf.mxu0 }
 0x1a8   : > { %v1173_v48 = vpop.f32.mrf.mxu1 }
 0x1a9   : > { %v1342_v50 = vmul.f32 %v1172_v42, %v1172_v42  ;;  %v791_v53 = vpop.f32.mrf.mxu0 }
 0x1aa   : > { %v1176_v55 = vpop.f32.mrf.mxu1 }
 0x1ab   : > { %v3279_v56 = vadd.f32 %v1342_v50, %v1310_v40  ;;  %v1177_v59 = vadd.f32 %v1176_v55, %v791_v53  ;;  %v793_v62 = vpop.f32.mrf.mxu0 }
 0x1ac   : > { %v1178_v1 = vpop.f32.mrf.mxu1 }
 0x1ad   : > { %v1343_v3 = vmul.f32 %v1177_v59, %v1177_v59  ;;  %v796_v13 = vpop.f32.mrf.mxu0 }
 0x1ae   : > { %v1181_v6 = vpop.f32.mrf.mxu1 }
 0x1af   : > { %v3283_v8 = vadd.f32 %v1343_v3, %v1311_v49  ;;  %v1182_v9 = vadd.f32 %v1181_v6, %v796_v13  ;;  %v798_v16 = vpop.f32.mrf.mxu0 }
 0x1b0   : > { %v1183_v17 = vpop.f32.mrf.mxu1 }
 0x1b1   : > { %v1344_v18 = vmul.f32 %v1182_v9, %v1182_v9  ;;  %v801_v22 = vpop.f32.mrf.mxu0 }
 0x1b2   : > { %v1186_v19 = vpop.f32.mrf.mxu1 }
 0x1b3   : > { %v3287_v25 = vadd.f32 %v1344_v18, %v1312_v58  ;;  %v1187_v26 = vadd.f32 %v1186_v19, %v801_v22  ;;  %v803_v29 = vpop.f32.mrf.mxu0 }
 0x1b4   : > { %v1188_v30 = vpop.f32.mrf.mxu1 }
 0x1b5   : > { %v1345_v33 = vmul.f32 %v1187_v26, %v1187_v26  ;;  %v806_v31 = vpop.f32.mrf.mxu0 }
 0x1b6   : > { %v1191_v35 = vpop.f32.mrf.mxu1 }
 0x1b7   : > { %v3291_v37 = vadd.f32 %v1345_v33, %v1313_v4  ;;  %v1192_v39 = vadd.f32 %v1191_v35, %v806_v31  ;;  %v808_v42 = vpop.f32.mrf.mxu0 }
 0x1b8   : > { %v1193_v47 = vpop.f32.mrf.mxu1 }
 0x1b9   : > { %v1346_v48 = vmul.f32 %v1192_v39, %v1192_v39  ;;  %v811_v40 = vpop.f32.mrf.mxu0  ;;  %v1538_v39 = vld [vmem:[%s3564_s2 + $0x48] sm:$0xff] }
 0x1ba   : > { %v1196_v50 = vpop.f32.mrf.mxu1  ;;  %1629 = vmatprep.mubr.f32.mxu1 %v1538_v39 }
 0x1bb   : > { %v3295_v53 = vadd.f32 %v1346_v48, %v1314_v14  ;;  %v1197_v55 = vadd.f32 %v1196_v50, %v811_v40  ;;  %v813_v59 = vpop.f32.mrf.mxu0 }
 0x1bc   : > { %v1198_v62 = vpop.f32.mrf.mxu1 }
 0x1bd   : > { %v1347_v1 = vmul.f32 %v1197_v55, %v1197_v55  ;;  %v816_v49 = vpop.f32.mrf.mxu0 }
 0x1be   : > { %v1201_v3 = vpop.f32.mrf.mxu1 }
 0x1bf   : > { %v3299_v13 = vadd.f32 %v1347_v1, %v1315_v24  ;;  %v1202_v6 = vadd.f32 %v1201_v3, %v816_v49  ;;  %v818_v9 = vpop.f32.mrf.mxu0  ;;  %v1319_v24 = vmul.f32 %v3215_v23, %v3215_v23  ;;  %v1321_v23 = vmul.f32 %v3225_v38, %v3225_v38 }
 0x1c0   : > { %v1203_v16 = vpop.f32.mrf.mxu1  ;;  %v1323_v38 = vmul.f32 %v3229_v51, %v3229_v51  ;;  %v1325_v51 = vmul.f32 %v3233_v63, %v3233_v63 }
 0x1c1   : > { %v1348_v17 = vmul.f32 %v1202_v6, %v1202_v6  ;;  %v821_v58 = vpop.f32.mrf.mxu0 }
 0x1c2   : > { %v1206_v18 = vpop.f32.mrf.mxu1 }
 0x1c3   : > { %v3303_v22 = vadd.f32 %v1348_v17, %v1316_v34  ;;  %v1207_v19 = vadd.f32 %v1206_v18, %v821_v58  ;;  %v823_v26 = vpop.f32.mrf.mxu0 }
 0x1c4   : > { %v1208_v29 = vpop.f32.mrf.mxu1 }
 0x1c5   : > { %v1349_v30 = vmul.f32 %v1207_v19, %v1207_v19  ;;  %v826_v4 = vpop.f32.mrf.mxu0 }
 0x1c6   : > { %v1211_v33 = vpop.f32.mrf.mxu1 }
 0x1c7   : > { %v3307_v31 = vadd.f32 %v1349_v30, %v1317_v44  ;;  %v1212_v35 = vadd.f32 %v1211_v33, %v826_v4  ;;  %v828_v42 = vpop.f32.mrf.mxu0 }
 0x1c8   : > { %v1213_v47 = vpop.f32.mrf.mxu1 }
 0x1c9   : > { %v1350_v14 = vmul.f32 %v1212_v35, %v1212_v35  ;;  %v831_v48 = vpop.f32.mrf.mxu0 }
 0x1ca   : > { %v1216_v40 = vpop.f32.mrf.mxu1 }
 0x1cb   : > { %v3317_v50 = vadd.f32 %v1350_v14, %v1318_v0  ;;  %v1217_v55 = vadd.f32 %v1216_v40, %v831_v48  ;;  %v833_v59 = vpop.f32.mrf.mxu0 }
 0x1cc   : > { %v1218_v62 = vpop.f32.mrf.mxu1 }
 0x1cd   : > { %v1351_v1 = vmul.f32 %v1217_v55, %v1217_v55  ;;  %v836_v49 = vpop.f32.mrf.mxu0 }
 0x1ce   : > { %v1221_v3 = vpop.f32.mrf.mxu1 }
 0x1cf   : > { %v3321_v6 = vadd.f32 %v1351_v1, %v1319_v24  ;;  %v1222_v9 = vadd.f32 %v1221_v3, %v836_v49  ;;  %v838_v16 = vpop.f32.mrf.mxu0 }
 0x1d0   : > { %v1223_v34 = vpop.f32.mrf.mxu1 }
 0x1d1   : > { %v1352_v17 = vmul.f32 %v1222_v9, %v1222_v9  ;;  %v841_v58 = vpop.f32.mrf.mxu0 }
 0x1d2   : > { %v1226_v18 = vpop.f32.mrf.mxu1 }
 0x1d3   : > { %v3325_v19 = vadd.f32 %v1352_v17, %v1320_v11  ;;  %v1227_v26 = vadd.f32 %v1226_v18, %v841_v58  ;;  %v843_v29 = vpop.f32.mrf.mxu0 }
 0x1d4   : > { %v1228_v44 = vpop.f32.mrf.mxu1 }
 0x1d5   : > { %v1353_v30 = vmul.f32 %v1227_v26, %v1227_v26  ;;  %v846_v4 = vpop.f32.mrf.mxu0 }
 0x1d6   : > { %v1231_v33 = vpop.f32.mrf.mxu1 }
 0x1d7   : > { %v3329_v35 = vadd.f32 %v1353_v30, %v1321_v23  ;;  %v1232_v54 = vadd.f32 %v1231_v33, %v846_v4  ;;  %v848_v39 = vpop.f32.mrf.mxu0 }
 0x1d8   : > { %v1233_v42 = vpop.f32.mrf.mxu1 }
 0x1d9   : > { %3569 = vst [vmem:[#allocation5_spill] sm:$0xff] %v3329_v35  ;;  %v1354_v47 = vmul.f32 %v1232_v54, %v1232_v54  ;;  %v851_v0 = vpop.f32.mrf.mxu0 }
 0x1da   : > { %v1236_v14 = vpop.f32.mrf.mxu1 }
 0x1db   : > { %v3333_v48 = vadd.f32 %v1354_v47, %v1322_v32  ;;  %v1237_v40 = vadd.f32 %v1236_v14, %v851_v0  ;;  %v853_v55 = vpop.f32.mrf.mxu0 }
 0x1dc   : > { %v1238_v59 = vpop.f32.mrf.mxu1 }
 0x1dd   : > { %v1355_v62 = vmul.f32 %v1237_v40, %v1237_v40  ;;  %v856_v24 = vpop.f32.mrf.mxu0 }
 0x1de   : > { %v1241_v1 = vpop.f32.mrf.mxu1 }
 0x1df   : > { %v3337_v49 = vadd.f32 %v1355_v62, %v1323_v38  ;;  %v1242_v3 = vadd.f32 %v1241_v1, %v856_v24  ;;  %v858_v9 = vpop.f32.mrf.mxu0 }
 0x1e0   : > { %v1243_v16 = vpop.f32.mrf.mxu1 }
 0x1e1   : > { %v1356_v34 = vmul.f32 %v1242_v3, %v1242_v3  ;;  %v861_v11 = vpop.f32.mrf.mxu0 }
 0x1e2   : > { %v1246_v17 = vpop.f32.mrf.mxu1 }
 0x1e3   : > { %v3341_v58 = vadd.f32 %v1356_v34, %v1324_v45  ;;  %v1247_v18 = vadd.f32 %v1246_v17, %v861_v11  ;;  %v863_v26 = vpop.f32.mrf.mxu0 }
 0x1e4   : > { %v1248_v29 = vpop.f32.mrf.mxu1 }
 0x1e5   : > { %v1357_v44 = vmul.f32 %v1247_v18, %v1247_v18  ;;  %v3345_v23 = vpop.f32.mrf.mxu0 }
 0x1e6   : > { %v3347_v30 = vpop.f32.mrf.mxu1 }
 0x1e7   : > { %v3349_v4 = vadd.f32 %v1357_v44, %v1325_v51  ;;  %v868_v33 = vpop.f32.mrf.mxu0 }
 0x1e8   : > { %v1253_v57 = vpop.f32.mrf.mxu1 }
 0x1e9   : > { %v3351_v54 = vpop.f32.mrf.mxu0 }
 0x1ea   : > { %v3353_v39 = vpop.f32.mrf.mxu1 }
 0x1eb   : > { %v873_v42 = vpop.f32.mrf.mxu0 }
 0x1ec   : > { %v1258_v32 = vpop.f32.mrf.mxu1 }
 0x1ed   : > { %v3355_v47 = vpop.f32.mrf.mxu0 }
 0x1ee   : > { %v3357_v0 = vpop.f32.mrf.mxu1 }
 0x1ef   : > { %v878_v63 = vpop.f32.mrf.mxu0 }
 0x1f0   : > { %v1263_v14 = vpop.f32.mrf.mxu1 }
 0x1f1   : > { %v881_v40 = vpop.f32.mrf.mxu0 }
 0x1f2   : > { %v1266_v55 = vpop.f32.mrf.mxu1 }
 0x1f3   : > { %v883_v59 = vpop.f32.mrf.mxu0 }
 0x1f4   : > { %v1268_v38 = vpop.f32.mrf.mxu1 }
 0x1f5   : > { %v886_v62 = vpop.f32.mrf.mxu0 }
 0x1f6   : > { %v1271_v24 = vpop.f32.mrf.mxu1 }
 0x1f7   : > { %v888_v1 = vpop.f32.mrf.mxu0 }
 0x1f8   : > { %v1273_v3 = vpop.f32.mrf.mxu1 }
 0x1f9   : > { %v891_v9 = vpop.f32.mrf.mxu0 }
 0x1fa   : > { %v1276_v16 = vpop.f32.mrf.mxu1 }
 0x1fb   : > { %v893_v45 = vpop.f32.mrf.mxu0 }
 0x1fc   : > { %v1278_v34 = vpop.f32.mrf.mxu1 }
 0x1fd   : > { %v896_v11 = vpop.f32.mrf.mxu0  ;;  %v1334_v34 = vmul.f32 %v3251_v5, %v3251_v5 }
 0x1fe   : > { %v1281_v17 = vpop.f32.mrf.mxu1 }
 0x1ff   : > { %v898_v18 = vpop.f32.mrf.mxu0  ;;  %v1282_v2 = vadd.f32 %v1281_v17, %v896_v11  ;;  %v1272_v17 = vadd.f32 %v1271_v24, %v886_v62 }
 0x200   : > { %v1283_v26 = vpop.f32.mrf.mxu1 }
 0x201   : > { %v901_v29 = vpop.f32.mrf.mxu0  ;;  %v1362_v62 = vmul.f32 %v1272_v17, %v1272_v17 }
 0x202   : > { %v1286_v51 = vpop.f32.mrf.mxu1 }
 0x203   : > { %v903_v44 = vpop.f32.mrf.mxu0  ;;  %v1287_v59 = vadd.f32 %v1286_v51, %v901_v29  ;;  %v1415_v29 = vadd.f32 1e-18, %v3321_v6 }
 0x204   : > { %v1288_v33 = vpop.f32.mrf.mxu1  ;;  %v1335_v44 = vmul.f32 %v3253_v12, %v3253_v12  ;;  %v1336_v12 = vmul.f32 %v3255_v21, %v3255_v21  ;;  %v1262_v21 = vadd.f32 %v3357_v0, %v3355_v47  ;;  %v1252_v47 = vadd.f32 %v3347_v30, %v3345_v23 }
 0x205   : > { %v906_v57 = vpop.f32.mrf.mxu0  ;;  %v1277_v33 = vadd.f32 %v1276_v16, %v891_v9  ;;  %v1365_v46 = vmul.f32 %v1287_v59, %v1287_v59  ;;  %v1416_v9 = vadd.f32 1e-18, %v3325_v19  ;;  %v1267_v16 = vadd.f32 %v1266_v55, %v881_v40 }
 0x206   : > { %v1291_v42 = vpop.f32.mrf.mxu1  ;;  %2145 = vlog2.f32 %v1415_v29  ;;  %v1414_v55 = vadd.f32 1e-18, %v3317_v50  ;;  %v1360_v0 = vmul.f32 %v1262_v21, %v1262_v21  ;;  %v1358_v23 = vmul.f32 %v1252_v47, %v1252_v47 }
 0x207   : > { %v1292_v32 = vadd.f32 %v1291_v42, %v906_v57  ;;  %v908_v63 = vpop.f32.mrf.mxu0  ;;  %v1333_v57 = vmul.f32 %v3249_v60, %v3249_v60  ;;  %2147 = vlog2.f32 %v1416_v9  ;;  %v1361_v24 = vmul.f32 %v1267_v16, %v1267_v16 }
 0x208   : > { %v1293_v14 = vpop.f32.mrf.mxu1  ;;  %v1404_v21 = vadd.f32 1e-18, %v3271_v27 }
 0x209   : > { %v1366_v38 = vmul.f32 %v1292_v32, %v1292_v32  ;;  %v911_v1 = vpop.f32.mrf.mxu0  ;;  %v1364_v32 = vmul.f32 %v1282_v2, %v1282_v2  ;;  %v1332_v14 = vmul.f32 %v3247_v52, %v3247_v52  ;;  %v1397_v6 = vadd.f32 %v1365_v46, %v1333_v57 }
 0x20a   : > { %v1296_v3 = vpop.f32.mrf.mxu1  ;;  %v1330_v2 = vmul.f32 %v3243_v36, %v3243_v36  ;;  %v1257_v46 = vadd.f32 %v3353_v39, %v3351_v54  ;;  %v1328_v54 = vmul.f32 %v3239_v20, %v3239_v20  ;;  %v1412_v39 = vadd.f32 1e-18, %v3303_v22 }
 0x20b   : > { %v1297_v45 = vadd.f32 %v1296_v3, %v911_v1  ;;  %v913_v18 = vpop.f32.mrf.mxu0  ;;  %v1398_v51 = vadd.f32 %v1366_v38, %v1334_v34  ;;  %v1363_v1 = vmul.f32 %v1277_v33, %v1277_v33  ;;  %v1396_v19 = vadd.f32 %v1364_v32, %v1332_v14 }
 0x20c   : > { %v1298_v26 = vpop.f32.mrf.mxu1  ;;  %v1429_v36 = vadd.f32 1e-18, %v1397_v6  ;;  %v1413_v18 = vadd.f32 1e-18, %v3307_v31  ;;  %v1394_v50 = vadd.f32 %v1362_v62, %v1330_v2  ;;  %v1411_v31 = vadd.f32 1e-18, %v3299_v13 }
 0x20d   : > { %v1367_v35 = vmul.f32 %v1297_v45, %v1297_v45  ;;  %v916_v42 = vpop.f32.mrf.mxu0  ;;  %v1430_v52 = vadd.f32 1e-18, %v1398_v51  ;;  %v1428_v26 = vadd.f32 1e-18, %v1396_v19  ;;  %v1392_v30 = vadd.f32 %v1360_v0, %v1328_v54 }
 0x20e   : > { %v1301_v11 = vpop.f32.mrf.mxu1  ;;  %v1426_v29 = vadd.f32 1e-18, %v1394_v50  ;;  %v1410_v51 = vadd.f32 1e-18, %v3295_v53  ;;  %v1326_v20 = vmul.f32 %v3235_v7, %v3235_v7  ;;  %v1408_v32 = vadd.f32 1e-18, %v3287_v25 }
 0x20f   : > { %v1399_v63 = vadd.f32 %v1367_v35, %v1335_v44  ;;  %v1302_v5 = vadd.f32 %v1301_v11, %v916_v42  ;;  %v918_v59 = vpop.f32.mrf.mxu0  ;;  %v1331_v35 = vmul.f32 %v3245_v43, %v3245_v43  ;;  %v1329_v43 = vmul.f32 %v3241_v28, %v3241_v28  ;;  %v3570_v50 = vld [vmem:[#allocation5_spill] sm:$0xff] }
 0x210   : > { %v1303_v60 = vpop.f32.mrf.mxu1  ;;  %v1359_v44 = vmul.f32 %v1257_v46, %v1257_v46  ;;  %v1327_v28 = vmul.f32 %v3237_v15, %v3237_v15  ;;  %v1409_v11 = vadd.f32 1e-18, %v3291_v37  ;;  %v1390_v17 = vadd.f32 %v1358_v23, %v1326_v20 }
 0x211   : > { %v1431_v38 = vadd.f32 1e-18, %v1399_v63  ;;  %v1368_v3 = vmul.f32 %v1302_v5, %v1302_v5  ;;  %v1395_v45 = vadd.f32 %v1363_v1, %v1331_v35  ;;  %v1393_v33 = vadd.f32 %v1361_v24, %v1329_v43 }
 0x212   : > { %v1391_v22 = vadd.f32 %v1359_v44, %v1327_v28  ;;  %v1424_v13 = vadd.f32 1e-18, %v1392_v30  ;;  %v1407_v14 = vadd.f32 1e-18, %v3283_v8  ;;  %v1406_v37 = vadd.f32 1e-18, %v3279_v56 }
 0x213   : > { %v1400_v40 = vadd.f32 %v1368_v3, %v1336_v12  ;;  %2149 = vlog2.f32 %v1431_v38  ;;  %v1427_v57 = vadd.f32 1e-18, %v1395_v45  ;;  %v1425_v42 = vadd.f32 1e-18, %v1393_v33  ;;  %v2146_v15 = vpop.eup %2145  ;;  %v3571_v44 = vld [vmem:[#allocation4_spill] sm:$0xff] }
 0x214   : > { %2151 = vlog2.f32 %v1430_v52  ;;  %v2148_v63 = vpop.eup %2147  ;;  %v1423_v5 = vadd.f32 1e-18, %v1391_v22  ;;  %v1422_v12 = vadd.f32 1e-18, %v1390_v17  ;;  %v1421_v60 = vadd.f32 1e-18, %v3349_v4 }
 0x215   : > { %v1432_v34 = vadd.f32 1e-18, %v1400_v40  ;;  %v1464_v16 = vmul.f32 0.6931472, %v2148_v63  ;;  %v1405_v38 = vadd.f32 1e-18, %v3275_v41 }
 0x216   : > { %v1462_v8 = vmul.f32 0.6931472, %v2146_v15  ;;  %v1420_v2 = vadd.f32 1e-18, %v3341_v58  ;;  %v1419_v40 = vadd.f32 1e-18, %v3337_v49 }
 0x217   : > { %2153 = vlog2.f32 %v1432_v34  ;;  %v1512_v4 = vmul.f32 0.5, %v1464_v16  ;;  %v1403_v58 = vadd.f32 1e-18, %v3267_v10  ;;  %v1401_v33 = vadd.f32 1e-18, %v3571_v44 }
 0x218   : > { %2155 = vlog2.f32 %v1414_v55  ;;  %v1511_v45 = vmul.f32 0.5, %v1462_v8 }
 0x219   : > { %2157 = vlog2.f32 %v1429_v36  ;;  %v1418_v36 = vadd.f32 1e-18, %v3333_v48 }
 0x21a   : > { %2159 = vlog2.f32 %v1413_v18  ;;  %v1402_v18 = vadd.f32 1e-18, %v3263_v61 }
 0x21b   : > { %2161 = vlog2.f32 %v1428_v26  ;;  %v1417_v26 = vadd.f32 1e-18, %v3570_v50 }
 0x21c   : > { %2163 = vlog2.f32 %v1412_v39 }
 0x21d   : > { %2165 = vlog2.f32 %v1427_v57 }
 0x21e   : > { %2167 = vlog2.f32 %v1411_v31 }
 0x21f   : > { %2169 = vlog2.f32 %v1426_v29 }
 0x220   : > { %2171 = vlog2.f32 %v1410_v51  ;;  %v2150_v53 = vpop.eup %2149 }
 0x221   : > { %2173 = vlog2.f32 %v1425_v42  ;;  %v2152_v7 = vpop.eup %2151  ;;  %v1494_v1 = vmul.f32 0.6931472, %v2150_v53 }
 0x222   : > { %2175 = vlog2.f32 %v1409_v11  ;;  %v1492_v52 = vmul.f32 0.6931472, %v2152_v7 }
 0x223   : > { %2177 = vlog2.f32 %v1424_v13  ;;  %v1527_v41 = vmul.f32 0.5, %v1494_v1 }
 0x224   : > { %v2154_v9 = vpop.eup %2153  ;;  %2179 = vlog2.f32 %v1408_v32  ;;  %v1526_v49 = vmul.f32 0.5, %v1492_v52 }
 0x225   : > { %v2156_v59 = vpop.eup %2155  ;;  %2181 = vlog2.f32 %v1423_v5  ;;  %v1496_v25 = vmul.f32 0.6931472, %v2154_v9 }
 0x226   : > { %v2158_v6 = vpop.eup %2157  ;;  %2183 = vlog2.f32 %v1407_v14  ;;  %v1460_v62 = vmul.f32 0.6931472, %v2156_v59 }
 0x227   : > { %v2160_v3 = vpop.eup %2159  ;;  %2185 = vlog2.f32 %v1422_v12  ;;  %v1528_v35 = vmul.f32 0.5, %v1496_v25  ;;  %v1490_v55 = vmul.f32 0.6931472, %v2158_v6 }
 0x228   : > { %v2162_v56 = vpop.eup %2161  ;;  %2187 = vlog2.f32 %v1406_v37  ;;  %v1458_v24 = vmul.f32 0.6931472, %v2160_v3  ;;  %v1510_v10 = vmul.f32 0.5, %v1460_v62 }
 0x229   : > { %v2164_v19 = vpop.eup %2163  ;;  %2189 = vlog2.f32 %v1421_v60  ;;  %2029 = vmatprep.subr.mxu0 %v1528_v35  ;;  %2085 = vmatprep.subr.mxu1 %v1528_v35  ;;  %v1488_v34 = vmul.f32 0.6931472, %v2162_v56  ;;  %v1525_v48 = vmul.f32 0.5, %v1490_v55 }
 0x22a   : > { %v2166_v46 = vpop.eup %2165  ;;  %2191 = vlog2.f32 %v1405_v38  ;;  %2030 = vmatpush3.msra.mxu0 %v1512_v4  ;;  %2101 = vmatpush3.msra.mxu1 %v1512_v4  ;;  %v1456_v47 = vmul.f32 0.6931472, %v2164_v19  ;;  %v1509_v61 = vmul.f32 0.5, %v1458_v24 }
 0x22b   : > { %v2168_v27 = vpop.eup %2167  ;;  %2193 = vlog2.f32 %v1420_v2  ;;  %2031 = vmatprep.subr.mxu0 %v1527_v41  ;;  %2086 = vmatprep.subr.mxu1 %v1527_v41  ;;  %v1486_v54 = vmul.f32 0.6931472, %v2166_v46  ;;  %v1524_v31 = vmul.f32 0.5, %v1488_v34 }
 0x22c   : > { %v2170_v43 = vpop.eup %2169  ;;  %2195 = vlog2.f32 %v1404_v21  ;;  %2032 = vmatpush3.msra.mxu0 %v1511_v45  ;;  %2102 = vmatpush3.msra.mxu1 %v1511_v45  ;;  %v1454_v57 = vmul.f32 0.6931472, %v2168_v27  ;;  %v1508_v51 = vmul.f32 0.5, %v1456_v47 }
 0x22d   : > { %v2172_v0 = vpop.eup %2171  ;;  %2197 = vlog2.f32 %v1419_v40  ;;  %2033 = vmatprep.subr.mxu0 %v1526_v49  ;;  %2087 = vmatprep.subr.mxu1 %v1526_v49  ;;  %v1484_v23 = vmul.f32 0.6931472, %v2170_v43  ;;  %v1523_v22 = vmul.f32 0.5, %v1486_v54 }
 0x22e   : > { %v2174_v39 = vpop.eup %2173  ;;  %2199 = vlog2.f32 %v1403_v58  ;;  %2034 = vmatpush3.msra.mxu0 %v1510_v10  ;;  %2103 = vmatpush3.msra.mxu1 %v1510_v10  ;;  %v1452_v29 = vmul.f32 0.6931472, %v2172_v0  ;;  %v1507_v17 = vmul.f32 0.5, %v1454_v57  ;;  %v1537_v57 = vld [vmem:[%s3564_s2 + $0x40] sm:$0xff] }
 0x22f   : > { %v2176_v28 = vpop.eup %2175  ;;  %2201 = vlog2.f32 %v1418_v36  ;;  %2035 = vmatprep.subr.mxu0 %v1525_v48  ;;  %2088 = vmatprep.subr.mxu1 %v1525_v48  ;;  %v1482_v42 = vmul.f32 0.6931472, %v2174_v39  ;;  %v1522_v32 = vmul.f32 0.5, %v1484_v23  ;;  %v1531_v23 = vld [vmem:[%s3564_s2 + $0x10] sm:$0xff] }
 0x230   : > { %v2178_v30 = vpop.eup %2177  ;;  %2203 = vlog2.f32 %v1402_v18  ;;  %2036 = vmatpush3.msra.mxu0 %v1509_v61  ;;  %2104 = vmatpush3.msra.mxu1 %v1509_v61  ;;  %v1450_v15 = vmul.f32 0.6931472, %v2176_v28  ;;  %v1506_v14 = vmul.f32 0.5, %v1452_v29  ;;  %v1540_v61 = vld [vmem:[%s3564_s2 + $0x58] sm:$0xff]  ;;  %v1542_v29 = vld [vmem:[%s3564_s2 + $0x68] sm:$0xff] }
 0x231   : > { %v2180_v20 = vpop.eup %2179  ;;  %2205 = vlog2.f32 %v1417_v26  ;;  %2037 = vmatprep.subr.mxu0 %v1524_v31  ;;  %2089 = vmatprep.subr.mxu1 %v1524_v31  ;;  %v1480_v63 = vmul.f32 0.6931472, %v2178_v30  ;;  %v1521_v12 = vmul.f32 0.5, %v1482_v42  ;;  %v1532_v28 = vld [vmem:[%s3564_s2 + $0x18] sm:$0xff]  ;;  %v1539_v31 = vld [vmem:[%s3564_s2 + $0x50] sm:$0xff]  ;;  %v1534_v30 = vld [vmem:[%s3564_s2 + $0x28] sm:$0xff] }
 0x232   : > { %v2182_v11 = vpop.eup %2181  ;;  %2207 = vlog2.f32 %v1401_v33  ;;  %2038 = vmatpush3.msra.mxu0 %v1508_v51  ;;  %2105 = vmatpush3.msra.mxu1 %v1508_v51  ;;  %v1448_v53 = vmul.f32 0.6931472, %v2180_v20  ;;  %v1505_v59 = vmul.f32 0.5, %v1450_v15  ;;  %v1529_v33 = vld [vmem:[%s3564_s2] sm:$0xff]  ;;  %v1544_v42 = vld [vmem:[%s3564_s2 + $0x78] sm:$0xff]  ;;  %v1543_v15 = vld [vmem:[%s3564_s2 + $0x70] sm:$0xff] }
 0x233   : > { %v2184_v13 = vpop.eup %2183  ;;  %2039 = vmatprep.subr.mxu0 %v1523_v22  ;;  %2090 = vmatprep.subr.mxu1 %v1523_v22  ;;  %v1478_v9 = vmul.f32 0.6931472, %v2182_v11  ;;  %v1520_v25 = vmul.f32 0.5, %v1480_v63  ;;  %v1533_v51 = vld [vmem:[%s3564_s2 + $0x20] sm:$0xff]  ;;  %v1536_v22 = vld [vmem:[%s3564_s2 + $0x38] sm:$0xff]  ;;  %v1535_v11 = vld [vmem:[%s3564_s2 + $0x30] sm:$0xff] }
 0x234   : > { %v2186_v5 = vpop.eup %2185  ;;  %2040 = vmatpush3.msra.mxu0 %v1507_v17  ;;  %2106 = vmatpush3.msra.mxu1 %v1507_v17  ;;  %v1446_v16 = vmul.f32 0.6931472, %v2184_v13  ;;  %v1504_v8 = vmul.f32 0.5, %v1448_v53  ;;  %v1541_v20 = vld [vmem:[%s3564_s2 + $0x60] sm:$0xff]  ;;  %v3572_v17 = vmov 0.0   ;;  %v1651_v13 = vlaneseq }
 0x235   : > { %v2188_v7 = vpop.eup %2187  ;;  %2041 = vmatprep.subr.mxu0 %v1522_v32  ;;  %2091 = vmatprep.subr.mxu1 %v1522_v32  ;;  %v1476_v1 = vmul.f32 0.6931472, %v2186_v5  ;;  %v1519_v2 = vmul.f32 0.5, %v1478_v9  ;;  %199 = vst.msk [vmem:[#allocation2] sm:$0xff] %vm198_vm0, %v3572_v17  ;;  %200 = vst.msk [vmem:[#allocation2 + $0x8] sm:$0xff] %vm198_vm0, %v3572_v17 }
 0x236   : > { %v2190_v37 = vpop.eup %2189  ;;  %2042 = vmatpush3.msra.mxu0 %v1506_v14  ;;  %2107 = vmatpush3.msra.mxu1 %v1506_v14  ;;  %v1444_v38 = vmul.f32 0.6931472, %v2188_v7  ;;  %v1503_v21 = vmul.f32 0.5, %v1446_v16  ;;  %201 = vst.msk [vmem:[#allocation2 + $0x10] sm:$0xff] %vm198_vm0, %v3572_v17  ;;  %202 = vst.msk [vmem:[#allocation2 + $0x18] sm:$0xff] %vm198_vm0, %v3572_v17  ;;  %v1652_v32 = vand.u32 127, %v1651_v13 }
 0x237   : > { %v2192_v60 = vpop.eup %2191  ;;  %2043 = vmatprep.subr.mxu0 %v1521_v12  ;;  %2092 = vmatprep.subr.mxu1 %v1521_v12  ;;  %v1474_v35 = vmul.f32 0.6931472, %v2190_v37  ;;  %v1518_v4 = vmul.f32 0.5, %v1476_v1  ;;  %203 = vst.msk [vmem:[#allocation2 + $0x20] sm:$0xff] %vm198_vm0, %v3572_v17  ;;  %204 = vst.msk [vmem:[#allocation2 + $0x28] sm:$0xff] %vm198_vm0, %v3572_v17 }
 0x238   : > { %v2194_v6 = vpop.eup %2193  ;;  %2044 = vmatpush3.msra.mxu0 %v1505_v59  ;;  %2108 = vmatpush3.msra.mxu1 %v1505_v59  ;;  %v1442_v56 = vmul.f32 0.6931472, %v2192_v60  ;;  %v1502_v55 = vmul.f32 0.5, %v1444_v38  ;;  %205 = vst.msk [vmem:[#allocation2 + $0x30] sm:$0xff] %vm198_vm0, %v3572_v17  ;;  %206 = vst.msk [vmem:[#allocation2 + $0x38] sm:$0xff] %vm198_vm0, %v3572_v17  ;;  %vm1655_vm1 = vcmp.lt.s32.totalorder %v1652_v32, 32 }
 0x239   : > { %v2196_v3 = vpop.eup %2195  ;;  %2045 = vmatprep.subr.mxu0 %v1520_v25  ;;  %2093 = vmatprep.subr.mxu1 %v1520_v25  ;;  %v1472_v19 = vmul.f32 0.6931472, %v2194_v6  ;;  %v1517_v58 = vmul.f32 0.5, %v1474_v35  ;;  %207 = vst.msk [vmem:[#allocation3] sm:$0xff] %vm198_vm0, %v3572_v17  ;;  %208 = vst.msk [vmem:[#allocation3 + $0x8] sm:$0xff] %vm198_vm0, %v3572_v17  ;;  %v2024_v7 = vsel %vm1655_vm1, 1.0, %v3572_v17 }
 0x23a   : > { %v2198_v52 = vpop.eup %2197  ;;  %2046 = vmatpush3.msra.mxu0 %v1504_v8  ;;  %2109 = vmatpush3.msra.mxu1 %v1504_v8  ;;  %v1440_v41 = vmul.f32 0.6931472, %v2196_v3  ;;  %v1501_v36 = vmul.f32 0.5, %v1442_v56  ;;  %209 = vst.msk [vmem:[#allocation3 + $0x10] sm:$0xff] %vm198_vm0, %v3572_v17  ;;  %210 = vst.msk [vmem:[#allocation3 + $0x18] sm:$0xff] %vm198_vm0, %v3572_v17 }
 0x23b   : > { %v2200_v62 = vpop.eup %2199  ;;  %2047 = vmatprep.subr.mxu0 %v1519_v2  ;;  %2094 = vmatprep.subr.mxu1 %v1519_v2  ;;  %v1470_v24 = vmul.f32 0.6931472, %v2198_v52  ;;  %v1516_v34 = vmul.f32 0.5, %v1472_v19  ;;  %211 = vst.msk [vmem:[#allocation3 + $0x20] sm:$0xff] %vm198_vm0, %v3572_v17  ;;  %212 = vst.msk [vmem:[#allocation3 + $0x28] sm:$0xff] %vm198_vm0, %v3572_v17 }
 0x23c   : > { %v2202_v40 = vpop.eup %2201  ;;  %2048 = vmatpush3.msra.mxu0 %v1503_v21  ;;  %2110 = vmatpush3.msra.mxu1 %v1503_v21  ;;  %v1438_v27 = vmul.f32 0.6931472, %v2200_v62  ;;  %v1500_v47 = vmul.f32 0.5, %v1440_v41  ;;  %213 = vst.msk [vmem:[#allocation3 + $0x30] sm:$0xff] %vm198_vm0, %v3572_v17  ;;  %214 = vst.msk [vmem:[#allocation3 + $0x38] sm:$0xff] %vm198_vm0, %v3572_v17 }
 0x23d   : > { %v2204_v46 = vpop.eup %2203  ;;  %2049 = vmatprep.subr.mxu0 %v1518_v4  ;;  %2095 = vmatprep.subr.mxu1 %v1518_v4  ;;  %v1468_v43 = vmul.f32 0.6931472, %v2202_v40  ;;  %v1515_v10 = vmul.f32 0.5, %v1470_v24 }
 0x23e   : > { %v2206_v45 = vpop.eup %2205  ;;  %2050 = vmatpush3.msra.mxu0 %v1502_v55  ;;  %2111 = vmatpush3.msra.mxu1 %v1502_v55  ;;  %v1436_v18 = vmul.f32 0.6931472, %v2204_v46  ;;  %v1499_v26 = vmul.f32 0.5, %v1438_v27 }
 0x23f   : > { %v2208_v49 = vpop.eup %2207  ;;  %2051 = vmatprep.subr.mxu0 %v1517_v58  ;;  %2096 = vmatprep.subr.mxu1 %v1517_v58  ;;  %v1466_v0 = vmul.f32 0.6931472, %v2206_v45  ;;  %v1514_v48 = vmul.f32 0.5, %v1468_v43  ;;  %v2250_v43 = vmov 0  }
 0x240   : > { %2052 = vmatpush3.msra.mxu0 %v1501_v36  ;;  %2112 = vmatpush3.msra.mxu1 %v1501_v36  ;;  %v1434_v50 = vmul.f32 0.6931472, %v2208_v49  ;;  %v1498_v54 = vmul.f32 0.5, %v1436_v18 }
 0x241   : > { %2053 = vmatprep.subr.mxu0 %v1516_v34  ;;  %2097 = vmatprep.subr.mxu1 %v1516_v34  ;;  %v1513_v39 = vmul.f32 0.5, %v1466_v0 }
 0x242   : > { %2054 = vmatpush3.msra.mxu0 %v1500_v47  ;;  %2113 = vmatpush3.msra.mxu1 %v1500_v47  ;;  %v1497_v44 = vmul.f32 0.5, %v1434_v50 }
 0x243   : > { %2055 = vmatprep.subr.mxu0 %v1515_v10  ;;  %2098 = vmatprep.subr.mxu1 %v1515_v10 }
 0x244   : > { %2056 = vmatpush3.msra.mxu0 %v1499_v26  ;;  %2114 = vmatpush3.msra.mxu1 %v1499_v26  ;;  %v1666_v26 = vld [vmem:[#allocation2] sm:$0xff] }
 0x245   : > { %2057 = vmatprep.subr.mxu0 %v1514_v48  ;;  %2099 = vmatprep.subr.mxu1 %v1514_v48 }
 0x246   : > { %2058 = vmatpush3.msra.mxu0 %v1498_v54  ;;  %2115 = vmatpush3.msra.mxu1 %v1498_v54 }
 0x247   : > { %2059 = vmatprep.subr.mxu0 %v1513_v39  ;;  %2100 = vmatprep.subr.mxu1 %v1513_v39  ;;  %v1671_v39 = vld [vmem:[#allocation2 + $0x28] sm:$0xff] }
 0x248   : > { %2060 = vmatpush3.msra.mxu0 %v1497_v44  ;;  %2116 = vmatpush3.msra.mxu1 %v1497_v44  ;;  %v1670_v44 = vld [vmem:[#allocation2 + $0x20] sm:$0xff] }
 0x249   : > { %1610 = vmatmul.mubr.f32.vlgmr.msra.gmra.mxu0 %v1529_v33  ;;  %1630 = vmatmul.mubr.f32.vlgmr.msra.gmra.mxu1 %v1537_v57 }
 0x24a   : > { %1634 = vmatprep.mubr.f32.mxu1 %v1540_v61  ;;  %1614 = vmatprep.mubr.f32.mxu0 %v1532_v28 }
 0x24b   : > { %2143 = vset.pattern.permute.xlu0 %v2250_v43  ;;  %2144 = vset.pattern.permute.xlu1 %v2250_v43 }
 0x24d   : > { %1635 = vmatmul.mubr.f32.gmra.mxu1 %v1539_v31  ;;  %1615 = vmatmul.mubr.f32.gmra.mxu0 %v1531_v23  ;;  %v1708_v31 = vld [vmem:[#allocation3 + $0x8] sm:$0xff]  ;;  %v1707_v23 = vld [vmem:[#allocation3] sm:$0xff] }
 0x24e   : > { %1619 = vmatprep.mubr.f32.mxu0 %v1534_v30  ;;  %1639 = vmatprep.mubr.f32.mxu1 %v1542_v29 }
 0x251   : > { %1620 = vmatmul.mubr.f32.gmra.mxu0 %v1533_v51  ;;  %1640 = vmatmul.mubr.f32.gmra.mxu1 %v1541_v20 }
 0x252   : > { %1624 = vmatprep.mubr.f32.mxu0 %v1536_v22  ;;  %1644 = vmatprep.mubr.f32.mxu1 %v1544_v42  ;;  %v1712_v22 = vld [vmem:[#allocation3 + $0x28] sm:$0xff]  ;;  %v1711_v42 = vld [vmem:[#allocation3 + $0x20] sm:$0xff] }
 0x255   : > { %1625 = vmatmul.mubr.f32.gmra.mxu0 %v1535_v11  ;;  %1645 = vmatmul.mubr.f32.gmra.mxu1 %v1543_v15 }
 0x309   : > { %v2061_v63 = vpop.f32.mrf.mxu0  ;;  %v2073_v5 = vpop.f32.mrf.mxu1 }
 0x30b   : > { %v2062_v53 = vpop.f32.mrf.mxu0  ;;  %v2074_v14 = vpop.f32.mrf.mxu1 }
 0x30c   : > { %v3483_v12 = vadd.f32 %v2062_v53, %v2061_v63  ;;  %v3485_v16 = vadd.f32 %v2074_v14, %v2073_v5  ;;  %v1668_v5 = vld [vmem:[#allocation2 + $0x10] sm:$0xff]  ;;  %v1667_v53 = vld [vmem:[#allocation2 + $0x8] sm:$0xff] }
 0x30d   : > { %v2076_v9 = vpop.f32.mrf.mxu1  ;;  %v2064_v37 = vpop.f32.mrf.mxu0 }
 0x30e   : > { %v1658_v59 = vmul.f32 %v3483_v12, %v2024_v7  ;;  %v1662_v3 = vmul.f32 %v3485_v16, %v2024_v7 }
 0x30f   : > { %v2077_v60 = vpop.f32.mrf.mxu1  ;;  %v2065_v25 = vpop.f32.mrf.mxu0 }
 0x310   : > { %v3488_v1 = vadd.f32 %v2077_v60, %v2076_v9  ;;  %1674 = vadd.xlane.f32.xlu0 %v1658_v59  ;;  %v3490_v6 = vadd.f32 %v2065_v25, %v2064_v37  ;;  %v1715_v21 = vmul.f32 %v3483_v12, %v1658_v59  ;;  %v1719_v41 = vmul.f32 %v3485_v16, %v1662_v3  ;;  %v1669_v25 = vld [vmem:[#allocation2 + $0x18] sm:$0xff] }
 0x311   : > { %v2067_v38 = vpop.f32.mrf.mxu0  ;;  %v2079_v52 = vpop.f32.mrf.mxu1 }
 0x312   : > { %v1663_v8 = vmul.f32 %v3488_v1, %v2024_v7  ;;  %v1659_v2 = vmul.f32 %v3490_v6, %v2024_v7 }
 0x313   : > { %v2068_v35 = vpop.f32.mrf.mxu0  ;;  %v2080_v4 = vpop.f32.mrf.mxu1 }
 0x314   : > { %1684 = vadd.xlane.f32.xlu1 %v1663_v8  ;;  %1682 = vadd.xlane.f32.xlu0 %v1662_v3  ;;  %v1716_v56 = vmul.f32 %v3490_v6, %v1659_v2  ;;  %v3497_v19 = vadd.f32 %v2068_v35, %v2067_v38  ;;  %v1720_v40 = vmul.f32 %v3488_v1, %v1663_v8  ;;  %v1672_v38 = vld [vmem:[#allocation2 + $0x30] sm:$0xff] }
 0x315   : > { %v2070_v62 = vpop.f32.mrf.mxu0  ;;  %v2082_v46 = vpop.f32.mrf.mxu1  ;;  %v3503_v24 = vadd.f32 %v2080_v4, %v2079_v52 }
 0x316   : > { %v1660_v45 = vmul.f32 %v3497_v19, %v2024_v7 }
 0x317   : > { %v2071_v55 = vpop.f32.mrf.mxu0  ;;  %v2083_v27 = vpop.f32.mrf.mxu1  ;;  %v1664_v34 = vmul.f32 %v3503_v24, %v2024_v7 }
 0x318   : > { %1725 = vadd.xlane.f32.xlu1 %v1716_v56  ;;  %1723 = vadd.xlane.f32.xlu0 %v1715_v21  ;;  %v3501_v58 = vadd.f32 %v2071_v55, %v2070_v62  ;;  %v3506_v36 = vadd.f32 %v2083_v27, %v2082_v46  ;;  %v1717_v47 = vmul.f32 %v3497_v19, %v1660_v45  ;;  %v1673_v21 = vld [vmem:[#allocation2 + $0x38] sm:$0xff]  ;;  %v1709_v62 = vld [vmem:[#allocation3 + $0x10] sm:$0xff] }
 0x319   : > { %v1721_v0 = vmul.f32 %v3503_v24, %v1664_v34 }
 0x31a   : > { %v1661_v49 = vmul.f32 %v3501_v58, %v2024_v7  ;;  %v1665_v18 = vmul.f32 %v3506_v36, %v2024_v7 }
 0x31c   : > { %1733 = vadd.xlane.f32.xlu1 %v1720_v40  ;;  %1731 = vadd.xlane.f32.xlu0 %v1719_v41  ;;  %v1718_v10 = vmul.f32 %v3501_v58, %v1661_v49  ;;  %v1722_v50 = vmul.f32 %v3506_v36, %v1665_v18 }
 0x320   : > { %1678 = vadd.xlane.f32.xlu1 %v1660_v45  ;;  %1676 = vadd.xlane.f32.xlu0 %v1659_v2 }
 0x324   : > { %1680 = vadd.xlane.f32.xlu1 %v1661_v49  ;;  %1686 = vadd.xlane.f32.xlu0 %v1664_v34  ;;  %v1710_v34 = vld [vmem:[#allocation3 + $0x18] sm:$0xff] }
 0x328   : > { %1688 = vadd.xlane.f32.xlu1 %v1665_v18  ;;  %1727 = vadd.xlane.f32.xlu0 %v1717_v47  ;;  %v1713_v47 = vld [vmem:[#allocation3 + $0x30] sm:$0xff] }
 0x32c   : > { %1729 = vadd.xlane.f32.xlu1 %v1718_v10  ;;  %1735 = vadd.xlane.f32.xlu0 %v1721_v0 }
 0x330   : > { %1737 = vadd.xlane.f32.xlu1 %v1722_v50 }
 0x399   : > { %v1675_v48 = vpop.xlane.xlu0 %1674 }
 0x39a   : > { %v1690_v54 = vadd.f32 %v1675_v48, %v1666_v26 }
 0x39c   : > { %1699 = vst.msk [vmem:[#allocation2] sm:$0xff] %vm198_vm0, %v1690_v54 }
 0x39d   : > { %v1685_v33 = vpop.xlane.xlu1 %1684  ;;  %v1683_v57 = vpop.xlane.xlu0 %1682 }
 0x39e   : > { %v1695_v61 = vadd.f32 %v1685_v33, %v1671_v39  ;;  %v1694_v28 = vadd.f32 %v1683_v57, %v1670_v44 }
 0x3a0   : > { %1704 = vst.msk [vmem:[#allocation2 + $0x28] sm:$0xff] %vm198_vm0, %v1695_v61  ;;  %1703 = vst.msk [vmem:[#allocation2 + $0x20] sm:$0xff] %vm198_vm0, %v1694_v28 }
 0x3a1   : > { %v1726_v30 = vpop.xlane.xlu1 %1725  ;;  %v1724_v29 = vpop.xlane.xlu0 %1723 }
 0x3a2   : > { %v1740_v51 = vadd.f32 %v1726_v30, %v1708_v31  ;;  %v1739_v20 = vadd.f32 %v1724_v29, %v1707_v23  ;;  %v1714_v31 = vld [vmem:[#allocation3 + $0x38] sm:$0xff] }
 0x3a3   : > { %v1769_v11 = vld [vmem:[#allocation2] sm:$0xff] }
 0x3a4   : > { %1748 = vst.msk [vmem:[#allocation3 + $0x8] sm:$0xff] %vm198_vm0, %v1740_v51  ;;  %1747 = vst.msk [vmem:[#allocation3] sm:$0xff] %vm198_vm0, %v1739_v20  ;;  %v1777_v15 = vmul.f32 0.03125, %v1769_v11 }
 0x3a5   : > { %v1734_v17 = vpop.xlane.xlu1 %1733  ;;  %v1732_v13 = vpop.xlane.xlu0 %1731 }
 0x3a6   : > { %v1744_v32 = vadd.f32 %v1734_v17, %v1712_v22  ;;  %v1743_v63 = vadd.f32 %v1732_v13, %v1711_v42  ;;  %1843 = vperm.xlu0 %2143, %v1777_v15   ;;  %v1801_v10 = vmul.f32 %v1777_v15, %v1777_v15 }
 0x3a7   : > { %v1773_v14 = vld [vmem:[#allocation2 + $0x20] sm:$0xff]  ;;  %v1774_v52 = vld [vmem:[#allocation2 + $0x28] sm:$0xff] }
 0x3a8   : > { %1752 = vst.msk [vmem:[#allocation3 + $0x28] sm:$0xff] %vm198_vm0, %v1744_v32  ;;  %1751 = vst.msk [vmem:[#allocation3 + $0x20] sm:$0xff] %vm198_vm0, %v1743_v63  ;;  %v1781_v7 = vmul.f32 0.03125, %v1773_v14  ;;  %v1782_v55 = vmul.f32 0.03125, %v1774_v52 }
 0x3a9   : > { %v1679_v9 = vpop.xlane.xlu1 %1678  ;;  %v1677_v37 = vpop.xlane.xlu0 %1676 }
 0x3aa   : > { %v1692_v59 = vadd.f32 %v1679_v9, %v1668_v5  ;;  %v1691_v60 = vadd.f32 %v1677_v37, %v1667_v53  ;;  %1863 = vperm.xlu1 %2144, %v1781_v7   ;;  %v1806_v54 = vmul.f32 %v1782_v55, %v1782_v55  ;;  %v1805_v51 = vmul.f32 %v1781_v7, %v1781_v7 }
 0x3ab   : > { %v1785_v56 = vld [vmem:[#allocation3] sm:$0xff]  ;;  %v1786_v27 = vld [vmem:[#allocation3 + $0x8] sm:$0xff] }
 0x3ac   : > { %1701 = vst.msk [vmem:[#allocation2 + $0x10] sm:$0xff] %vm198_vm0, %v1692_v59  ;;  %1700 = vst.msk [vmem:[#allocation2 + $0x8] sm:$0xff] %vm198_vm0, %v1691_v60  ;;  %v1793_v46 = vmul.f32 0.03125, %v1785_v56  ;;  %v1794_v48 = vmul.f32 0.03125, %v1786_v27 }
 0x3ad   : > { %v1681_v8 = vpop.xlane.xlu1 %1680  ;;  %v1687_v3 = vpop.xlane.xlu0 %1686 }
 0x3ae   : > { %v1693_v2 = vadd.f32 %v1681_v8, %v1669_v25  ;;  %v1696_v35 = vadd.f32 %v1687_v3, %v1672_v38  ;;  %v1809_v44 = vsub.f32 %v1793_v46, %v1801_v10 }
 0x3af   : > { %v1790_v4 = vld [vmem:[#allocation3 + $0x28] sm:$0xff]  ;;  %v1789_v0 = vld [vmem:[#allocation3 + $0x20] sm:$0xff] }
 0x3b0   : > { %1702 = vst.msk [vmem:[#allocation2 + $0x18] sm:$0xff] %vm198_vm0, %v1693_v2  ;;  %1705 = vst.msk [vmem:[#allocation2 + $0x30] sm:$0xff] %vm198_vm0, %v1696_v35  ;;  %v1798_v18 = vmul.f32 0.03125, %v1790_v4  ;;  %v1797_v28 = vmul.f32 0.03125, %v1789_v0  ;;  %v1817_v42 = vadd.f32 1e-05, %v1809_v44 }
 0x3b1   : > { %v1689_v40 = vpop.xlane.xlu1 %1688  ;;  %v1728_v41 = vpop.xlane.xlu0 %1727 }
 0x3b2   : > { %v1697_v45 = vadd.f32 %v1689_v40, %v1673_v21  ;;  %v1741_v49 = vadd.f32 %v1728_v41, %v1709_v62  ;;  %v1814_v23 = vsub.f32 %v1798_v18, %v1806_v54  ;;  %v1813_v13 = vsub.f32 %v1797_v28, %v1805_v51 }
 0x3b3   : > { %v1770_v43 = vld [vmem:[#allocation2 + $0x8] sm:$0xff]  ;;  %v1771_v30 = vld [vmem:[#allocation2 + $0x10] sm:$0xff] }
 0x3b4   : > { %1706 = vst.msk [vmem:[#allocation2 + $0x38] sm:$0xff] %vm198_vm0, %v1697_v45  ;;  %v1778_v50 = vmul.f32 0.03125, %v1770_v43  ;;  %1749 = vst.msk [vmem:[#allocation3 + $0x10] sm:$0xff] %vm198_vm0, %v1741_v49  ;;  %v1779_v17 = vmul.f32 0.03125, %v1771_v30  ;;  %v1822_v32 = vadd.f32 1e-05, %v1814_v23 }
 0x3b5   : > { %v1730_v26 = vpop.xlane.xlu1 %1729  ;;  %v1736_v39 = vpop.xlane.xlu0 %1735  ;;  %v1821_v59 = vadd.f32 1e-05, %v1813_v13 }
 0x3b6   : > { %v1742_v33 = vadd.f32 %v1730_v26, %v1710_v34  ;;  %1848 = vperm.xlu1 %2144, %v1778_v50   ;;  %v1802_v57 = vmul.f32 %v1778_v50, %v1778_v50  ;;  %v1745_v61 = vadd.f32 %v1736_v39, %v1713_v47  ;;  %v1803_v37 = vmul.f32 %v1779_v17, %v1779_v17 }
 0x3b7   : > { %v1772_v22 = vld [vmem:[#allocation2 + $0x18] sm:$0xff]  ;;  %v1775_v5 = vld [vmem:[#allocation2 + $0x30] sm:$0xff] }
 0x3b8   : > { %1750 = vst.msk [vmem:[#allocation3 + $0x18] sm:$0xff] %vm198_vm0, %v1742_v33  ;;  %v1810_v29 = vsub.f32 %v1794_v48, %v1802_v57  ;;  %1753 = vst.msk [vmem:[#allocation3 + $0x30] sm:$0xff] %vm198_vm0, %v1745_v61  ;;  %v1780_v14 = vmul.f32 0.03125, %v1772_v22  ;;  %v1783_v7 = vmul.f32 0.03125, %v1775_v5 }
 0x3b9   : > { %v1738_v20 = vpop.xlane.xlu1 %1737 }
 0x3ba   : > { %v1818_v11 = vadd.f32 1e-05, %v1810_v29  ;;  %v1746_v15 = vadd.f32 %v1738_v20, %v1714_v31  ;;  %1868 = vperm.xlu1 %2144, %v1782_v55   ;;  %v1804_v35 = vmul.f32 %v1780_v14, %v1780_v14  ;;  %v1807_v52 = vmul.f32 %v1783_v7, %v1783_v7 }
 0x3bb   : > { %v1787_v63 = vld [vmem:[#allocation3 + $0x10] sm:$0xff]  ;;  %v1776_v9 = vld [vmem:[#allocation2 + $0x38] sm:$0xff] }
 0x3bc   : > { %2209 = vrsqrt.f32 %v1818_v11  ;;  %1754 = vst.msk [vmem:[#allocation3 + $0x38] sm:$0xff] %vm198_vm0, %v1746_v15  ;;  %v1795_v53 = vmul.f32 0.03125, %v1787_v63  ;;  %v1784_v38 = vmul.f32 0.03125, %v1776_v9 }
 0x3bd   : > { %2211 = vrsqrt.f32 %v1817_v42 }
 0x3be   : > { %1853 = vperm.xlu1 %2144, %v1779_v17   ;;  %2213 = vrsqrt.f32 %v1822_v32  ;;  %v1811_v8 = vsub.f32 %v1795_v53, %v1803_v37  ;;  %v1808_v62 = vmul.f32 %v1784_v38, %v1784_v38 }
 0x3bf   : > { %v1791_v60 = vld [vmem:[#allocation3 + $0x30] sm:$0xff]  ;;  %v1788_v25 = vld [vmem:[#allocation3 + $0x18] sm:$0xff]  ;;  %2215 = vrsqrt.f32 %v1821_v59 }
 0x3c0   : > { %v1799_v3 = vmul.f32 0.03125, %v1791_v60  ;;  %v1796_v2 = vmul.f32 0.03125, %v1788_v25  ;;  %v1819_v4 = vadd.f32 1e-05, %v1811_v8 }
 0x3c2   : > { %1873 = vperm.xlu1 %2144, %v1783_v7   ;;  %v1812_v56 = vsub.f32 %v1796_v2, %v1804_v35  ;;  %v1815_v40 = vsub.f32 %v1799_v3, %v1807_v52 }
 0x3c3   : > { %v1792_v21 = vld [vmem:[#allocation3 + $0x38] sm:$0xff] }
 0x3c4   : > { %v1820_v41 = vadd.f32 1e-05, %v1812_v56  ;;  %v1800_v55 = vmul.f32 0.03125, %v1792_v21  ;;  %v1823_v45 = vadd.f32 1e-05, %v1815_v40 }
 0x3c6   : > { %1858 = vperm.xlu1 %2144, %v1780_v14   ;;  %v1816_v46 = vsub.f32 %v1800_v55, %v1808_v62  ;;  %2217 = vrsqrt.f32 %v1820_v41 }
 0x3c7   : > { %2219 = vrsqrt.f32 %v1819_v4 }
 0x3c8   : > { %v1824_v27 = vadd.f32 1e-05, %v1816_v46 }
 0x3c9   : > { %v2210_v49 = vpop.eup %2209 }
 0x3ca   : > { %1896 = vperm.xlu0 %2143, %v2210_v49   ;;  %2221 = vrsqrt.f32 %v1824_v27  ;;  %1878 = vperm.xlu1 %2144, %v1784_v38   ;;  %v2212_v34 = vpop.eup %2211 }
 0x3cb   : > { %v2214_v43 = vpop.eup %2213  ;;  %2223 = vrsqrt.f32 %v1823_v45 }
 0x3cc   : > { %v2216_v18 = vpop.eup %2215 }
 0x3ce   : > { %1916 = vperm.xlu0 %2143, %v2214_v43   ;;  %1891 = vperm.xlu1 %2144, %v2212_v34  }
 0x3d2   : > { %1911 = vperm.xlu1 %2144, %v2216_v18  }
 0x3d3   : > { %v2218_v47 = vpop.eup %2217 }
 0x3d4   : > { %v2220_v10 = vpop.eup %2219  ;;  %1906 = vperm.xlu0 %2143, %v2218_v47  }
 0x3d6   : > { %1901 = vperm.xlu1 %2144, %v2220_v10  }
 0x3d7   : > { %v2222_v0 = vpop.eup %2221 }
 0x3d8   : > { %v2224_v50 = vpop.eup %2223  ;;  %1926 = vperm.xlu0 %2143, %v2222_v0  }
 0x3da   : > { %1921 = vperm.xlu1 %2144, %v2224_v50  }
 0x421   : > { %v1844_v33 = vpop.permute.xlu0 %1843 }
 0x422   : > { %v1881_v30 = vsub.f32 %v3483_v12, %v1844_v33 }
 0x425   : > { %v1864_v26 = vpop.permute.xlu1 %1863 }
 0x426   : > { %v1885_v42 = vsub.f32 %v3485_v16, %v1864_v26 }
 0x431   : > { %v1849_v48 = vpop.permute.xlu1 %1848 }
 0x432   : > { %v1882_v61 = vsub.f32 %v3490_v6, %v1849_v48 }
 0x435   : > { %v1869_v54 = vpop.permute.xlu1 %1868 }
 0x436   : > { %v1886_v29 = vsub.f32 %v3488_v1, %v1869_v54 }
 0x439   : > { %v1854_v39 = vpop.permute.xlu1 %1853 }
 0x43a   : > { %v1883_v12 = vsub.f32 %v3497_v19, %v1854_v39 }
 0x43d   : > { %v1874_v44 = vpop.permute.xlu1 %1873 }
 0x43e   : > { %v1887_v16 = vsub.f32 %v3503_v24, %v1874_v44 }
 0x441   : > { %v1859_v57 = vpop.permute.xlu1 %1858 }
 0x442   : > { %v1884_v17 = vsub.f32 %v3501_v58, %v1859_v57 }
 0x445   : > { %v1879_v28 = vpop.permute.xlu1 %1878  ;;  %v1897_v31 = vpop.permute.xlu0 %1896 }
 0x446   : > { %v1930_v23 = vmul.f32 %v1897_v31, %v1882_v61  ;;  %v1888_v5 = vsub.f32 %v3506_v36, %v1879_v28 }
 0x448   : > { %1938 = vst [vmem:[%s3536_s11 + $0x8] sm:$0xff] %v1930_v23 }
 0x449   : > { %v1892_v51 = vpop.permute.xlu1 %1891  ;;  %v1917_v20 = vpop.permute.xlu0 %1916 }
 0x44a   : > { %v1929_v6 = vmul.f32 %v1892_v51, %v1881_v30  ;;  %v1934_v22 = vmul.f32 %v1917_v20, %v1886_v29 }
 0x44c   : > { %1937 = vst [vmem:[%s3536_s11] sm:$0xff] %v1929_v6  ;;  %1942 = vst [vmem:[%s3536_s11 + $0x28] sm:$0xff] %v1934_v22 }
 0x44d   : > { %v1912_v11 = vpop.permute.xlu1 %1911 }
 0x44e   : > { %v1933_v15 = vmul.f32 %v1912_v11, %v1885_v42 }
 0x44f   : > { %v1907_v1 = vpop.permute.xlu0 %1906 }
 0x450   : > { %1941 = vst [vmem:[%s3536_s11 + $0x20] sm:$0xff] %v1933_v15  ;;  %v1932_v13 = vmul.f32 %v1907_v1, %v1884_v17 }
 0x451   : > { %v1902_v32 = vpop.permute.xlu1 %1901 }
 0x452   : > { %v1931_v63 = vmul.f32 %v1902_v32, %v1883_v12  ;;  %1940 = vst [vmem:[%s3536_s11 + $0x18] sm:$0xff] %v1932_v13 }
 0x453   : > { %v1927_v53 = vpop.permute.xlu0 %1926 }
 0x454   : > { %1939 = vst [vmem:[%s3536_s11 + $0x10] sm:$0xff] %v1931_v63  ;;  %v1936_v14 = vmul.f32 %v1927_v53, %v1888_v5 }
 0x455   : > { %v1922_v9 = vpop.permute.xlu1 %1921 }
 0x456   : > { %v1935_v37 = vmul.f32 %v1922_v9, %v1887_v16  ;;  %1944 = vst [vmem:[%s3536_s11 + $0x38] sm:$0xff] %v1936_v14 }
 0x458   : > { %1943 = vst [vmem:[%s3536_s11 + $0x30] sm:$0xff] %v1935_v37 }
 0x459 PF: > { %s13_s14 = sadd.s32 1, %s2247_s14   ;;  %s3573_s12 = smov %s2243_s13 }
 0x45a   : > { %p10_p5 = scmp.ge.s32.totalorder %s13_s14, 4   ;;  %s3574_s13 = smov %s3576_s15 }
 0x45c   :  { %12 = sbr.rel (!%p10_p5) target bundleno = 2 (0x2), region = 71 }

</bundles_post_ra>
